<compile_context>
chip_gen: v7x
topology: tpu7x:2x2x1
jax: 0.10.0
libtpu: 0.0.40
codegen_flags: <defaults>
</compile_context>

<pallas_src>
import math
import jax
import jax.numpy as jnp
from jax import lax
from jax.experimental import pallas as pl
from jax.experimental.pallas import tpu as pltpu

# ----------------------------- config (small) -------------------------------
B, S = 2, 8
D_EMBED = 32
N_HEADS = 4
HEAD_DIM = D_EMBED // N_HEADS
N_LAYERS = 2
VOCAB = 256
D_FF = 4 * D_EMBED
LN_EPS = 1e-5
ATTN_SCALE = 1.0 / math.sqrt(D_EMBED)        # reference scales by 1/sqrt(d_embed)
_LOG2_S = S.bit_length() - 1                 # S, HEAD_DIM are powers of two
_LOG2_HD = HEAD_DIM.bit_length() - 1

# ------------------------- packed operand slab layout ------------------------
# width-32 slab: per layer 6 stacked (E,E) matrices + fc2 (D_FF,E); RoPE tables
# appended at the tail.  All row offsets are multiples of 8 (sublane slices).
OFF_WQ = 0 * D_EMBED          # W_q^T * attn_scale
OFF_WQP = 1 * D_EMBED         # (W_q^T @ P) * attn_scale  (RoPE pair-swap partner)
OFF_WK = 2 * D_EMBED          # W_k^T
OFF_WKP = 3 * D_EMBED         # W_k^T @ P
OFF_WV = 4 * D_EMBED          # W_v^T
OFF_WO = 5 * D_EMBED          # W_o^T
OFF_FC2 = 6 * D_EMBED         # fc2^T  (D_FF rows)
W32_LAYER_ROWS = 6 * D_EMBED + D_FF
W32_COS_ROW = N_LAYERS * W32_LAYER_ROWS
W32_SIN_ROW = W32_COS_ROW + B * S

# width-256 vector slab: per layer 6 rows, then one folded head-bias row.
VEC_LN1_W, VEC_LN1_B, VEC_LN2_W, VEC_LN2_B, VEC_FC2_B, VEC_FC1_B = range(6)
VEC_PER_LAYER = 6
VEC_HEAD_B_ROW = N_LAYERS * VEC_PER_LAYER


# --------------------------------- fused kernel ------------------------------
def _alpha_fused_kernel(x0_ref, w32_ref, fc1_ref, vec_ref, headw_ref, logits_ref):
    x = x0_ref[...]                                            # (B*S, E)
    cos = w32_ref[W32_COS_ROW:W32_COS_ROW + B * S, :]          # (B*S, E)
    sin = w32_ref[W32_SIN_ROW:W32_SIN_ROW + B * S, :]

    # Block head mask: stacked row r = h*S + q keeps only head h's columns.
    hs = N_HEADS * S
    r32 = lax.broadcasted_iota(jnp.int32, (hs, D_EMBED), 0)
    c32 = lax.broadcasted_iota(jnp.int32, (hs, D_EMBED), 1)
    head_mask = jnp.where((r32 >> _LOG2_S) == (c32 >> _LOG2_HD), 1.0, 0.0)
    # Causal mask on the (head*query, key) score layout.
    rs = lax.broadcasted_iota(jnp.int32, (hs, S), 0)
    ks = lax.broadcasted_iota(jnp.int32, (hs, S), 1)
    causal_keep = ks <= (rs & (S - 1))                         # (H*S, S) bool

    def layernorm(z, w, b):
        mu = jnp.mean(z, axis=-1, keepdims=True)
        zc = z - mu
        var = jnp.mean(zc * zc, axis=-1, keepdims=True)
        return zc * lax.rsqrt(var + LN_EPS) * w + b

    def layernorm_noaffine(z):            # final LN (affine folded into the head)
        mu = jnp.mean(z, axis=-1, keepdims=True)
        zc = z - mu
        var = jnp.mean(zc * zc, axis=-1, keepdims=True)
        return zc * lax.rsqrt(var + LN_EPS)

    def gelu(z):                          # exact erf GELU via A&S 7.1.26 polynomial
        az = jnp.abs(z) * 0.7071067811865476
        t = 1.0 / (1.0 + 0.3275911 * az)
        poly = ((((1.061405429 * t - 1.453152027) * t + 1.421413741) * t
                 - 0.284496736) * t + 0.254829592) * t
        erf_abs = 1.0 - poly * jnp.exp(-az * az)
        erf = jnp.where(z >= 0.0, erf_abs, -erf_abs)
        return 0.5 * z * (1.0 + erf)

    def attention(xln, base):
        def w(off, rows=D_EMBED):         # sublane slice of the width-32 slab
            return w32_ref[base + off: base + off + rows, :]

        # RoPE (pair-swap folded into partner weights) + attn_scale folded into Wq.
        q = (jnp.dot(xln, w(OFF_WQ), preferred_element_type=jnp.float32) * cos
             + jnp.dot(xln, w(OFF_WQP), preferred_element_type=jnp.float32) * sin)
        k = (jnp.dot(xln, w(OFF_WK), preferred_element_type=jnp.float32) * cos
             + jnp.dot(xln, w(OFF_WKP), preferred_element_type=jnp.float32) * sin)
        v = jnp.dot(xln, w(OFF_WV), preferred_element_type=jnp.float32)

        outs = []
        for b in range(B):                                     # B = 2, unrolled
            qb = q[b * S:(b + 1) * S, :]                       # (S, E) sublane slices
            kb = k[b * S:(b + 1) * S, :]
            vb = v[b * S:(b + 1) * S, :]
            # Queries replicated per head onto sublanes, masked to their head cols:
            # one matmul produces all 4 heads' scores, rows are (head, query).
            q_stk = jnp.concatenate([qb] * N_HEADS, axis=0) * head_mask   # (H*S, E)
            s = jnp.einsum('re,ke->rk', q_stk, kb,
                           preferred_element_type=jnp.float32)            # (H*S, S)
            s = jnp.where(causal_keep, s, -1e30)
            m = jnp.max(s, axis=-1, keepdims=True)
            p = jnp.exp(s - m)
            p = p * pl.reciprocal(jnp.sum(p, axis=-1, keepdims=True), approx=True)
            o = jnp.dot(p, vb, preferred_element_type=jnp.float32)        # (H*S, E)
            o = o * head_mask
            o = (o[0 * S:1 * S] + o[1 * S:2 * S]
                 + o[2 * S:3 * S] + o[3 * S:4 * S])            # (S, E), heads concat
            outs.append(o)
        o_cat = jnp.concatenate(outs, axis=0)                  # (B*S, E)
        return jnp.dot(o_cat, w(OFF_WO), preferred_element_type=jnp.float32)

    def feed_forward(xln, li, base):
        fc1_w = fc1_ref[li * D_EMBED:(li + 1) * D_EMBED, :]                # (E, 4E)
        fc1_b = vec_ref[li * VEC_PER_LAYER + VEC_FC1_B:
                        li * VEC_PER_LAYER + VEC_FC1_B + 1, 0:D_FF]        # (1, 4E)
        fc2_w = w32_ref[base + OFF_FC2: base + OFF_FC2 + D_FF, :]          # (4E, E)
        fc2_b = vec_ref[li * VEC_PER_LAYER + VEC_FC2_B:
                        li * VEC_PER_LAYER + VEC_FC2_B + 1, 0:D_EMBED]     # (1, E)
        h = gelu(jnp.dot(xln, fc1_w, preferred_element_type=jnp.float32) + fc1_b)
        return jnp.dot(h, fc2_w, preferred_element_type=jnp.float32) + fc2_b

    ff_out = jnp.zeros_like(x)
    for li in range(N_LAYERS):
        base = li * W32_LAYER_ROWS
        vbase = li * VEC_PER_LAYER
        ln1_w = vec_ref[vbase + VEC_LN1_W: vbase + VEC_LN1_W + 1, 0:D_EMBED]
        ln1_b = vec_ref[vbase + VEC_LN1_B: vbase + VEC_LN1_B + 1, 0:D_EMBED]
        ln2_w = vec_ref[vbase + VEC_LN2_W: vbase + VEC_LN2_W + 1, 0:D_EMBED]
        ln2_b = vec_ref[vbase + VEC_LN2_B: vbase + VEC_LN2_B + 1, 0:D_EMBED]
        if li == N_LAYERS - 1:
            # last block: x = x + ff_out; x = block(x)
            x = x + ff_out
            x = x + attention(layernorm(x, ln1_w, ln1_b), base)
            x = x + feed_forward(layernorm(x, ln2_w, ln2_b), li, base)
        else:
            # forward_inference: staggered feed-forward path
            ff_in = ff_out + x
            x = x + attention(layernorm(ff_in, ln1_w, ln1_b), base)
            ff_out = feed_forward(layernorm(x, ln2_w, ln2_b), li, base)

    # final LayerNorm affine folded into (head_w, head_b); tied lm_head matmul
    head_b = vec_ref[VEC_HEAD_B_ROW: VEC_HEAD_B_ROW + 1, 0:VOCAB]           # (1, V)
    logits_ref[...] = (jnp.dot(layernorm_noaffine(x), headw_ref[...],
                               preferred_element_type=jnp.float32) + head_b)


# ------------------------------ params / glue --------------------------------
def _xavier_t(key, fan_out, fan_in):
    # nn.init.xavier_normal_ on a (out, in) Linear weight, returned transposed
    std = math.sqrt(2.0 / (fan_in + fan_out))
    return (std * jax.random.normal(key, (fan_out, fan_in), jnp.float32)).T


def _vec_row(v):
    v = jnp.asarray(v, jnp.float32).reshape(1, -1)
    return jnp.pad(v, ((0, 0), (0, VOCAB - v.shape[1])))


def init_params(key):
    keys = jax.random.split(key, 1 + 6 * N_LAYERS)
    # tied embedding / lm_head weight (reference's _init_weights visits lm_head
    # last, so the shared (V, E) parameter ends up xavier_normal_ initialized)
    emb_std = math.sqrt(2.0 / (VOCAB + D_EMBED))
    emb = emb_std * jax.random.normal(keys[0], (VOCAB, D_EMBED), jnp.float32)

    # RoPE tables (torchtune interleaved convention), tiled to (B*S, E)
    inv_freq = 1.0 / (10000.0 ** (jnp.arange(0, HEAD_DIM, 2, dtype=jnp.float32)
                                  / HEAD_DIM))
    ang = jnp.arange(S, dtype=jnp.float32)[:, None] * inv_freq[None, :]    # (S, Dh/2)
    cos_flat = jnp.tile(jnp.repeat(jnp.cos(ang), 2, axis=1), (B, N_HEADS))
    sin_flat = jnp.tile(jnp.repeat(jnp.sin(ang), 2, axis=1), (B, N_HEADS))
    # pair-swap matrix P: (x @ P)[2i] = -x[2i+1], (x @ P)[2i+1] = x[2i]
    rope_p = jnp.kron(jnp.eye(D_EMBED // 2, dtype=jnp.float32),
                      jnp.array([[0.0, 1.0], [-1.0, 0.0]], jnp.float32))

    ones_e = jnp.ones((D_EMBED,), jnp.float32)
    zeros_e = jnp.zeros((D_EMBED,), jnp.float32)

    w32_rows, fc1_rows, vec_rows = [], [], []
    for i in range(N_LAYERS):
        kq, kk, kv, ko, k1, k2 = keys[1 + 6 * i: 7 + 6 * i]
        wq_t = _xavier_t(kq, D_EMBED, D_EMBED)
        wk_t = _xavier_t(kk, D_EMBED, D_EMBED)
        wv_t = _xavier_t(kv, D_EMBED, D_EMBED)
        wo_t = _xavier_t(ko, D_EMBED, D_EMBED)
        fc1_t = _xavier_t(k1, D_FF, D_EMBED)              # (E, 4E)
        fc2_t = _xavier_t(k2, D_EMBED, D_FF)              # (4E, E)
        # attn_scale folded into the Q path; RoPE pair-swap into partner weights
        w32_rows += [ATTN_SCALE * wq_t, ATTN_SCALE * (wq_t @ rope_p),
                     wk_t, wk_t @ rope_p, wv_t, wo_t, fc2_t]
        fc1_rows.append(fc1_t)
        vec_rows += [_vec_row(ones_e), _vec_row(zeros_e),             # ln1 w, b
                     _vec_row(ones_e), _vec_row(zeros_e),             # ln2 w, b
                     _vec_row(zeros_e),                               # fc2 bias
                     _vec_row(jnp.zeros((D_FF,), jnp.float32))]       # fc1 bias
    w32_rows += [cos_flat, sin_flat]

    # final LayerNorm affine folded into the tied head
    lnf_w, lnf_b = ones_e, zeros_e
    head_w = emb.T * lnf_w[:, None]                        # (E, V)
    vec_rows.append(_vec_row(lnf_b @ emb.T))               # folded head bias (1, V)

    return dict(
        emb=emb,                                           # (V, E), for the gather
        w32=jnp.concatenate(w32_rows, axis=0),             # (672, 32)
        fc1=jnp.concatenate(fc1_rows, axis=0),             # (64, 128)
        vec=jnp.concatenate(vec_rows, axis=0),             # (13, 256)
        head_w=head_w,                                     # (32, 256)
    )


@jax.jit
def alpha_forward(params, ids):
    """Inference path of Alpha.forward (targets=None): returns (logits, None)."""
    # Embedding gather in the wrapper (per review): pass (B*S, E) activations in.
    x0 = jnp.take(params['emb'], ids.reshape(-1).astype(jnp.int32), axis=0)
    logits_flat = pl.pallas_call(
        _alpha_fused_kernel,
        out_shape=jax.ShapeDtypeStruct((B * S, VOCAB), jnp.float32),
        in_specs=[pl.BlockSpec(memory_space=pltpu.MemorySpace.VMEM)] * 5,
        out_specs=pl.BlockSpec(memory_space=pltpu.MemorySpace.VMEM),
    )(x0, params['w32'], params['fc1'], params['vec'], params['head_w'])
    return logits_flat.reshape(B, S, VOCAB), None


if __name__ == "__main__":
    key = jax.random.PRNGKey(0)
    pkey, dkey = jax.random.split(key)
    params = init_params(pkey)
    ids = jax.random.randint(dkey, (B, S), 0, VOCAB, dtype=jnp.int32)

    logits, loss = alpha_forward(params, ids)
    jax.block_until_ready(logits)
    assert logits.shape == (B, S, VOCAB) and loss is None
    print("KERNEL_OK")
</pallas_src>

<mosaic_0001>
module attributes {stable_mosaic.version = 11 : i64} {
  func.func @_alpha_fused_kernel(%arg0: memref<16x32xf32, #tpu.memory_space<vmem>>, %arg1: memref<672x32xf32, #tpu.memory_space<vmem>>, %arg2: memref<64x128xf32, #tpu.memory_space<vmem>>, %arg3: memref<13x256xf32, #tpu.memory_space<vmem>>, %arg4: memref<32x256xf32, #tpu.memory_space<vmem>>, %arg5: memref<16x256xf32, #tpu.memory_space<vmem>>) attributes {dimension_semantics = [], scalar_prefetch = 0 : i64, scratch_operands = 0 : i64, tpu.core_type = #tpu.core_type<tc>} {
    %c0 = arith.constant 0 : index
    %c0_0 = arith.constant 0 : index
    %0 = vector.load %arg0[%c0, %c0_0] : memref<16x32xf32, #tpu.memory_space<vmem>>, vector<16x32xf32>
    %c640 = arith.constant 640 : index
    %c0_1 = arith.constant 0 : index
    %1 = vector.load %arg1[%c640, %c0_1] : memref<672x32xf32, #tpu.memory_space<vmem>>, vector<16x32xf32>
    %c656 = arith.constant 656 : index
    %c0_2 = arith.constant 0 : index
    %2 = vector.load %arg1[%c656, %c0_2] : memref<672x32xf32, #tpu.memory_space<vmem>>, vector<16x32xf32>
    %3 = tpu.iota {dimensions = array<i32: 0>} : vector<32x32xi32>
    %4 = tpu.iota {dimensions = array<i32: 1>} : vector<32x32xi32>
    %c3_i32 = arith.constant 3 : i32
    %5 = vector.broadcast %c3_i32 : i32 to vector<32x32xi32>
    %6 = arith.shrsi %3, %5 : vector<32x32xi32>
    %c3_i32_3 = arith.constant 3 : i32
    %7 = vector.broadcast %c3_i32_3 : i32 to vector<32x32xi32>
    %8 = arith.shrsi %4, %7 : vector<32x32xi32>
    %9 = arith.cmpi eq, %6, %8 : vector<32x32xi32>
    %cst = arith.constant 1.000000e+00 : f32
    %cst_4 = arith.constant 0.000000e+00 : f32
    %10 = vector.broadcast %cst : f32 to vector<32x32xf32>
    %11 = vector.broadcast %cst_4 : f32 to vector<32x32xf32>
    %12 = arith.select %9, %10, %11 : vector<32x32xi1>, vector<32x32xf32>
    %13 = tpu.iota {dimensions = array<i32: 0>} : vector<32x8xi32>
    %14 = tpu.iota {dimensions = array<i32: 1>} : vector<32x8xi32>
    %c7_i32 = arith.constant 7 : i32
    %15 = vector.broadcast %c7_i32 : i32 to vector<32x8xi32>
    %16 = arith.andi %13, %15 : vector<32x8xi32>
    %17 = arith.cmpi sle, %14, %16 : vector<32x8xi32>
    %cst_5 = arith.constant 0.000000e+00 : f32
    %18 = vector.broadcast %cst_5 : f32 to vector<16x32xf32>
    %c0_6 = arith.constant 0 : index
    %c0_7 = arith.constant 0 : index
    %19 = vector.load %arg3[%c0_6, %c0_7] : memref<13x256xf32, #tpu.memory_space<vmem>>, vector<1x32xf32>
    %c1 = arith.constant 1 : index
    %c0_8 = arith.constant 0 : index
    %20 = vector.load %arg3[%c1, %c0_8] : memref<13x256xf32, #tpu.memory_space<vmem>>, vector<1x32xf32>
    %c2 = arith.constant 2 : index
    %c0_9 = arith.constant 0 : index
    %21 = vector.load %arg3[%c2, %c0_9] : memref<13x256xf32, #tpu.memory_space<vmem>>, vector<1x32xf32>
    %c3 = arith.constant 3 : index
    %c0_10 = arith.constant 0 : index
    %22 = vector.load %arg3[%c3, %c0_10] : memref<13x256xf32, #tpu.memory_space<vmem>>, vector<1x32xf32>
    %23 = arith.addf %18, %0 : vector<16x32xf32>
    %cst_11 = arith.constant dense<0.000000e+00> : vector<16xf32>
    %24 = vector.multi_reduction <add>, %23, %cst_11 [1] : vector<16x32xf32> to vector<16xf32>
    %25 = vector.shape_cast %24 : vector<16xf32> to vector<16x1xf32>
    %cst_12 = arith.constant 3.200000e+01 : f32
    %26 = vector.broadcast %cst_12 : f32 to vector<16x1xf32>
    %27 = arith.divf %25, %26 : vector<16x1xf32>
    %28 = vector.broadcast %27 : vector<16x1xf32> to vector<16x32xf32>
    %29 = arith.subf %23, %28 : vector<16x32xf32>
    %30 = arith.mulf %29, %29 : vector<16x32xf32>
    %cst_13 = arith.constant dense<0.000000e+00> : vector<16xf32>
    %31 = vector.multi_reduction <add>, %30, %cst_13 [1] : vector<16x32xf32> to vector<16xf32>
    %32 = vector.shape_cast %31 : vector<16xf32> to vector<16x1xf32>
    %cst_14 = arith.constant 3.200000e+01 : f32
    %33 = vector.broadcast %cst_14 : f32 to vector<16x1xf32>
    %34 = arith.divf %32, %33 : vector<16x1xf32>
    %cst_15 = arith.constant 9.99999974E-6 : f32
    %35 = vector.broadcast %cst_15 : f32 to vector<16x1xf32>
    %36 = arith.addf %34, %35 : vector<16x1xf32>
    %37 = math.rsqrt %36 : vector<16x1xf32>
    %38 = vector.broadcast %37 : vector<16x1xf32> to vector<16x32xf32>
    %39 = arith.mulf %29, %38 : vector<16x32xf32>
    %40 = vector.broadcast %19 : vector<1x32xf32> to vector<16x32xf32>
    %41 = arith.mulf %39, %40 : vector<16x32xf32>
    %42 = vector.broadcast %20 : vector<1x32xf32> to vector<16x32xf32>
    %43 = arith.addf %41, %42 : vector<16x32xf32>
    %c0_16 = arith.constant 0 : index
    %c0_17 = arith.constant 0 : index
    %44 = vector.load %arg1[%c0_16, %c0_17] : memref<672x32xf32, #tpu.memory_space<vmem>>, vector<32x32xf32>
    %cst_18 = arith.constant dense<0.000000e+00> : vector<16x32xf32>
    %45 = tpu.matmul %43, %44, %cst_18 {dimension_numbers = #tpu.dot_dimension_numbers<[1], [0], [0], [1], [0, 0, 1, 1], [], []>} : vector<16x32xf32>, vector<32x32xf32>, vector<16x32xf32> -> vector<16x32xf32>
    %46 = arith.mulf %45, %1 : vector<16x32xf32>
    %c32 = arith.constant 32 : index
    %c0_19 = arith.constant 0 : index
    %47 = vector.load %arg1[%c32, %c0_19] : memref<672x32xf32, #tpu.memory_space<vmem>>, vector<32x32xf32>
    %cst_20 = arith.constant dense<0.000000e+00> : vector<16x32xf32>
    %48 = tpu.matmul %43, %47, %cst_20 {dimension_numbers = #tpu.dot_dimension_numbers<[1], [0], [0], [1], [0, 0, 1, 1], [], []>} : vector<16x32xf32>, vector<32x32xf32>, vector<16x32xf32> -> vector<16x32xf32>
    %49 = arith.mulf %48, %2 : vector<16x32xf32>
    %50 = arith.addf %46, %49 : vector<16x32xf32>
    %c64 = arith.constant 64 : index
    %c0_21 = arith.constant 0 : index
    %51 = vector.load %arg1[%c64, %c0_21] : memref<672x32xf32, #tpu.memory_space<vmem>>, vector<32x32xf32>
    %cst_22 = arith.constant dense<0.000000e+00> : vector<16x32xf32>
    %52 = tpu.matmul %43, %51, %cst_22 {dimension_numbers = #tpu.dot_dimension_numbers<[1], [0], [0], [1], [0, 0, 1, 1], [], []>} : vector<16x32xf32>, vector<32x32xf32>, vector<16x32xf32> -> vector<16x32xf32>
    %53 = arith.mulf %52, %1 : vector<16x32xf32>
    %c96 = arith.constant 96 : index
    %c0_23 = arith.constant 0 : index
    %54 = vector.load %arg1[%c96, %c0_23] : memref<672x32xf32, #tpu.memory_space<vmem>>, vector<32x32xf32>
    %cst_24 = arith.constant dense<0.000000e+00> : vector<16x32xf32>
    %55 = tpu.matmul %43, %54, %cst_24 {dimension_numbers = #tpu.dot_dimension_numbers<[1], [0], [0], [1], [0, 0, 1, 1], [], []>} : vector<16x32xf32>, vector<32x32xf32>, vector<16x32xf32> -> vector<16x32xf32>
    %56 = arith.mulf %55, %2 : vector<16x32xf32>
    %57 = arith.addf %53, %56 : vector<16x32xf32>
    %c128 = arith.constant 128 : index
    %c0_25 = arith.constant 0 : index
    %58 = vector.load %arg1[%c128, %c0_25] : memref<672x32xf32, #tpu.memory_space<vmem>>, vector<32x32xf32>
    %cst_26 = arith.constant dense<0.000000e+00> : vector<16x32xf32>
    %59 = tpu.matmul %43, %58, %cst_26 {dimension_numbers = #tpu.dot_dimension_numbers<[1], [0], [0], [1], [0, 0, 1, 1], [], []>} : vector<16x32xf32>, vector<32x32xf32>, vector<16x32xf32> -> vector<16x32xf32>
    %60 = vector.extract_strided_slice %50 {offsets = [0, 0], sizes = [8, 32], strides = [1, 1]} : vector<16x32xf32> to vector<8x32xf32>
    %61 = vector.extract_strided_slice %57 {offsets = [0, 0], sizes = [8, 32], strides = [1, 1]} : vector<16x32xf32> to vector<8x32xf32>
    %62 = vector.extract_strided_slice %59 {offsets = [0, 0], sizes = [8, 32], strides = [1, 1]} : vector<16x32xf32> to vector<8x32xf32>
    %63 = tpu.concatenate %60, %60, %60, %60 in 0 : vector<8x32xf32>, vector<8x32xf32>, vector<8x32xf32>, vector<8x32xf32> -> vector<32x32xf32>
    %64 = arith.mulf %63, %12 : vector<32x32xf32>
    "tpu.trace_start"() <{level = 10 : i32, message = "re,ke->rk"}> : () -> ()
    %cst_27 = arith.constant dense<0.000000e+00> : vector<32x8xf32>
    %65 = tpu.matmul %64, %61, %cst_27 {dimension_numbers = #tpu.dot_dimension_numbers<[1], [1], [0], [0], [0, 0, 1, 0], [], []>} : vector<32x32xf32>, vector<8x32xf32>, vector<32x8xf32> -> vector<32x8xf32>
    %cst_28 = arith.constant -1.000000e+30 : f32
    "tpu.trace_stop"() : () -> ()
    %66 = vector.broadcast %cst_28 : f32 to vector<32x8xf32>
    %67 = arith.select %17, %65, %66 : vector<32x8xi1>, vector<32x8xf32>
    %cst_29 = arith.constant dense<0xFF800000> : vector<32xf32>
    %68 = vector.multi_reduction <maximumf>, %67, %cst_29 [1] : vector<32x8xf32> to vector<32xf32>
    %69 = vector.shape_cast %68 : vector<32xf32> to vector<32x1xf32>
    %70 = vector.broadcast %69 : vector<32x1xf32> to vector<32x8xf32>
    %71 = arith.subf %67, %70 : vector<32x8xf32>
    %72 = math.exp %71 : vector<32x8xf32>
    %cst_30 = arith.constant dense<0.000000e+00> : vector<32xf32>
    %73 = vector.multi_reduction <add>, %72, %cst_30 [1] : vector<32x8xf32> to vector<32xf32>
    %74 = vector.shape_cast %73 : vector<32xf32> to vector<32x1xf32>
    %75 = tpu.reciprocal %74 {approx = true} : vector<32x1xf32> -> vector<32x1xf32>
    %76 = vector.broadcast %75 : vector<32x1xf32> to vector<32x8xf32>
    %77 = arith.mulf %72, %76 : vector<32x8xf32>
    %cst_31 = arith.constant dense<0.000000e+00> : vector<32x32xf32>
    %78 = tpu.matmul %77, %62, %cst_31 {dimension_numbers = #tpu.dot_dimension_numbers<[1], [0], [0], [1], [0, 0, 1, 1], [], []>} : vector<32x8xf32>, vector<8x32xf32>, vector<32x32xf32> -> vector<32x32xf32>
    %79 = arith.mulf %78, %12 : vector<32x32xf32>
    %80 = vector.extract_strided_slice %79 {offsets = [0, 0], sizes = [8, 32], strides = [1, 1]} : vector<32x32xf32> to vector<8x32xf32>
    %81 = vector.extract_strided_slice %79 {offsets = [8, 0], sizes = [8, 32], strides = [1, 1]} : vector<32x32xf32> to vector<8x32xf32>
    %82 = arith.addf %80, %81 : vector<8x32xf32>
    %83 = vector.extract_strided_slice %79 {offsets = [16, 0], sizes = [8, 32], strides = [1, 1]} : vector<32x32xf32> to vector<8x32xf32>
    %84 = arith.addf %82, %83 : vector<8x32xf32>
    %85 = vector.extract_strided_slice %79 {offsets = [24, 0], sizes = [8, 32], strides = [1, 1]} : vector<32x32xf32> to vector<8x32xf32>
    %86 = arith.addf %84, %85 : vector<8x32xf32>
    %87 = vector.extract_strided_slice %50 {offsets = [8, 0], sizes = [8, 32], strides = [1, 1]} : vector<16x32xf32> to vector<8x32xf32>
    %88 = vector.extract_strided_slice %57 {offsets = [8, 0], sizes = [8, 32], strides = [1, 1]} : vector<16x32xf32> to vector<8x32xf32>
    %89 = vector.extract_strided_slice %59 {offsets = [8, 0], sizes = [8, 32], strides = [1, 1]} : vector<16x32xf32> to vector<8x32xf32>
    %90 = tpu.concatenate %87, %87, %87, %87 in 0 : vector<8x32xf32>, vector<8x32xf32>, vector<8x32xf32>, vector<8x32xf32> -> vector<32x32xf32>
    %91 = arith.mulf %90, %12 : vector<32x32xf32>
    "tpu.trace_start"() <{level = 10 : i32, message = "re,ke->rk"}> : () -> ()
    %cst_32 = arith.constant dense<0.000000e+00> : vector<32x8xf32>
    %92 = tpu.matmul %91, %88, %cst_32 {dimension_numbers = #tpu.dot_dimension_numbers<[1], [1], [0], [0], [0, 0, 1, 0], [], []>} : vector<32x32xf32>, vector<8x32xf32>, vector<32x8xf32> -> vector<32x8xf32>
    %cst_33 = arith.constant -1.000000e+30 : f32
    "tpu.trace_stop"() : () -> ()
    %93 = vector.broadcast %cst_33 : f32 to vector<32x8xf32>
    %94 = arith.select %17, %92, %93 : vector<32x8xi1>, vector<32x8xf32>
    %cst_34 = arith.constant dense<0xFF800000> : vector<32xf32>
    %95 = vector.multi_reduction <maximumf>, %94, %cst_34 [1] : vector<32x8xf32> to vector<32xf32>
    %96 = vector.shape_cast %95 : vector<32xf32> to vector<32x1xf32>
    %97 = vector.broadcast %96 : vector<32x1xf32> to vector<32x8xf32>
    %98 = arith.subf %94, %97 : vector<32x8xf32>
    %99 = math.exp %98 : vector<32x8xf32>
    %cst_35 = arith.constant dense<0.000000e+00> : vector<32xf32>
    %100 = vector.multi_reduction <add>, %99, %cst_35 [1] : vector<32x8xf32> to vector<32xf32>
    %101 = vector.shape_cast %100 : vector<32xf32> to vector<32x1xf32>
    %102 = tpu.reciprocal %101 {approx = true} : vector<32x1xf32> -> vector<32x1xf32>
    %103 = vector.broadcast %102 : vector<32x1xf32> to vector<32x8xf32>
    %104 = arith.mulf %99, %103 : vector<32x8xf32>
    %cst_36 = arith.constant dense<0.000000e+00> : vector<32x32xf32>
    %105 = tpu.matmul %104, %89, %cst_36 {dimension_numbers = #tpu.dot_dimension_numbers<[1], [0], [0], [1], [0, 0, 1, 1], [], []>} : vector<32x8xf32>, vector<8x32xf32>, vector<32x32xf32> -> vector<32x32xf32>
    %106 = arith.mulf %105, %12 : vector<32x32xf32>
    %107 = vector.extract_strided_slice %106 {offsets = [0, 0], sizes = [8, 32], strides = [1, 1]} : vector<32x32xf32> to vector<8x32xf32>
    %108 = vector.extract_strided_slice %106 {offsets = [8, 0], sizes = [8, 32], strides = [1, 1]} : vector<32x32xf32> to vector<8x32xf32>
    %109 = arith.addf %107, %108 : vector<8x32xf32>
    %110 = vector.extract_strided_slice %106 {offsets = [16, 0], sizes = [8, 32], strides = [1, 1]} : vector<32x32xf32> to vector<8x32xf32>
    %111 = arith.addf %109, %110 : vector<8x32xf32>
    %112 = vector.extract_strided_slice %106 {offsets = [24, 0], sizes = [8, 32], strides = [1, 1]} : vector<32x32xf32> to vector<8x32xf32>
    %113 = arith.addf %111, %112 : vector<8x32xf32>
    %114 = tpu.concatenate %86, %113 in 0 : vector<8x32xf32>, vector<8x32xf32> -> vector<16x32xf32>
    %c160 = arith.constant 160 : index
    %c0_37 = arith.constant 0 : index
    %115 = vector.load %arg1[%c160, %c0_37] : memref<672x32xf32, #tpu.memory_space<vmem>>, vector<32x32xf32>
    %cst_38 = arith.constant dense<0.000000e+00> : vector<16x32xf32>
    %116 = tpu.matmul %114, %115, %cst_38 {dimension_numbers = #tpu.dot_dimension_numbers<[1], [0], [0], [1], [0, 0, 1, 1], [], []>} : vector<16x32xf32>, vector<32x32xf32>, vector<16x32xf32> -> vector<16x32xf32>
    %117 = arith.addf %0, %116 : vector<16x32xf32>
    %cst_39 = arith.constant dense<0.000000e+00> : vector<16xf32>
    %118 = vector.multi_reduction <add>, %117, %cst_39 [1] : vector<16x32xf32> to vector<16xf32>
    %119 = vector.shape_cast %118 : vector<16xf32> to vector<16x1xf32>
    %cst_40 = arith.constant 3.200000e+01 : f32
    %120 = vector.broadcast %cst_40 : f32 to vector<16x1xf32>
    %121 = arith.divf %119, %120 : vector<16x1xf32>
    %122 = vector.broadcast %121 : vector<16x1xf32> to vector<16x32xf32>
    %123 = arith.subf %117, %122 : vector<16x32xf32>
    %124 = arith.mulf %123, %123 : vector<16x32xf32>
    %cst_41 = arith.constant dense<0.000000e+00> : vector<16xf32>
    %125 = vector.multi_reduction <add>, %124, %cst_41 [1] : vector<16x32xf32> to vector<16xf32>
    %126 = vector.shape_cast %125 : vector<16xf32> to vector<16x1xf32>
    %cst_42 = arith.constant 3.200000e+01 : f32
    %127 = vector.broadcast %cst_42 : f32 to vector<16x1xf32>
    %128 = arith.divf %126, %127 : vector<16x1xf32>
    %cst_43 = arith.constant 9.99999974E-6 : f32
    %129 = vector.broadcast %cst_43 : f32 to vector<16x1xf32>
    %130 = arith.addf %128, %129 : vector<16x1xf32>
    %131 = math.rsqrt %130 : vector<16x1xf32>
    %132 = vector.broadcast %131 : vector<16x1xf32> to vector<16x32xf32>
    %133 = arith.mulf %123, %132 : vector<16x32xf32>
    %134 = vector.broadcast %21 : vector<1x32xf32> to vector<16x32xf32>
    %135 = arith.mulf %133, %134 : vector<16x32xf32>
    %136 = vector.broadcast %22 : vector<1x32xf32> to vector<16x32xf32>
    %137 = arith.addf %135, %136 : vector<16x32xf32>
    %c0_44 = arith.constant 0 : index
    %c0_45 = arith.constant 0 : index
    %138 = vector.load %arg2[%c0_44, %c0_45] : memref<64x128xf32, #tpu.memory_space<vmem>>, vector<32x128xf32>
    %c5 = arith.constant 5 : index
    %c0_46 = arith.constant 0 : index
    %139 = vector.load %arg3[%c5, %c0_46] : memref<13x256xf32, #tpu.memory_space<vmem>>, vector<1x128xf32>
    %c192 = arith.constant 192 : index
    %c0_47 = arith.constant 0 : index
    %140 = vector.load %arg1[%c192, %c0_47] : memref<672x32xf32, #tpu.memory_space<vmem>>, vector<128x32xf32>
    %c4 = arith.constant 4 : index
    %c0_48 = arith.constant 0 : index
    %141 = vector.load %arg3[%c4, %c0_48] : memref<13x256xf32, #tpu.memory_space<vmem>>, vector<1x32xf32>
    %cst_49 = arith.constant dense<0.000000e+00> : vector<16x128xf32>
    %142 = tpu.matmul %137, %138, %cst_49 {dimension_numbers = #tpu.dot_dimension_numbers<[1], [0], [0], [1], [0, 0, 1, 1], [], []>} : vector<16x32xf32>, vector<32x128xf32>, vector<16x128xf32> -> vector<16x128xf32>
    %143 = vector.broadcast %139 : vector<1x128xf32> to vector<16x128xf32>
    %144 = arith.addf %142, %143 : vector<16x128xf32>
    %145 = math.absf %144 : vector<16x128xf32>
    %cst_50 = arith.constant 0.707106769 : f32
    %146 = vector.broadcast %cst_50 : f32 to vector<16x128xf32>
    %147 = arith.mulf %145, %146 : vector<16x128xf32>
    %cst_51 = arith.constant 0.327591091 : f32
    %148 = vector.broadcast %cst_51 : f32 to vector<16x128xf32>
    %149 = arith.mulf %148, %147 : vector<16x128xf32>
    %cst_52 = arith.constant 1.000000e+00 : f32
    %150 = vector.broadcast %cst_52 : f32 to vector<16x128xf32>
    %151 = arith.addf %150, %149 : vector<16x128xf32>
    %cst_53 = arith.constant 1.000000e+00 : f32
    %152 = vector.broadcast %cst_53 : f32 to vector<16x128xf32>
    %153 = arith.divf %152, %151 : vector<16x128xf32>
    %cst_54 = arith.constant 1.06140542 : f32
    %154 = vector.broadcast %cst_54 : f32 to vector<16x128xf32>
    %155 = arith.mulf %154, %153 : vector<16x128xf32>
    %cst_55 = arith.constant 1.45315206 : f32
    %156 = vector.broadcast %cst_55 : f32 to vector<16x128xf32>
    %157 = arith.subf %155, %156 : vector<16x128xf32>
    %158 = arith.mulf %157, %153 : vector<16x128xf32>
    %cst_56 = arith.constant 1.42141378 : f32
    %159 = vector.broadcast %cst_56 : f32 to vector<16x128xf32>
    %160 = arith.addf %158, %159 : vector<16x128xf32>
    %161 = arith.mulf %160, %153 : vector<16x128xf32>
    %cst_57 = arith.constant 0.284496725 : f32
    %162 = vector.broadcast %cst_57 : f32 to vector<16x128xf32>
    %163 = arith.subf %161, %162 : vector<16x128xf32>
    %164 = arith.mulf %163, %153 : vector<16x128xf32>
    %cst_58 = arith.constant 0.254829586 : f32
    %165 = vector.broadcast %cst_58 : f32 to vector<16x128xf32>
    %166 = arith.addf %164, %165 : vector<16x128xf32>
    %167 = arith.mulf %166, %153 : vector<16x128xf32>
    %cst_59 = arith.constant 0.000000e+00 : f32
    %168 = vector.broadcast %cst_59 : f32 to vector<16x128xf32>
    %169 = arith.subf %168, %147 : vector<16x128xf32>
    %170 = arith.mulf %169, %147 : vector<16x128xf32>
    %171 = math.exp %170 : vector<16x128xf32>
    %172 = arith.mulf %167, %171 : vector<16x128xf32>
    %cst_60 = arith.constant 1.000000e+00 : f32
    %173 = vector.broadcast %cst_60 : f32 to vector<16x128xf32>
    %174 = arith.subf %173, %172 : vector<16x128xf32>
    %cst_61 = arith.constant 0.000000e+00 : f32
    %175 = vector.broadcast %cst_61 : f32 to vector<16x128xf32>
    %176 = arith.cmpf oge, %144, %175 : vector<16x128xf32>
    %cst_62 = arith.constant 0.000000e+00 : f32
    %177 = vector.broadcast %cst_62 : f32 to vector<16x128xf32>
    %178 = arith.subf %177, %174 : vector<16x128xf32>
    %179 = arith.select %176, %174, %178 : vector<16x128xi1>, vector<16x128xf32>
    %cst_63 = arith.constant 5.000000e-01 : f32
    %180 = vector.broadcast %cst_63 : f32 to vector<16x128xf32>
    %181 = arith.mulf %180, %144 : vector<16x128xf32>
    %cst_64 = arith.constant 1.000000e+00 : f32
    %182 = vector.broadcast %cst_64 : f32 to vector<16x128xf32>
    %183 = arith.addf %182, %179 : vector<16x128xf32>
    %184 = arith.mulf %181, %183 : vector<16x128xf32>
    %cst_65 = arith.constant dense<0.000000e+00> : vector<16x32xf32>
    %185 = tpu.matmul %184, %140, %cst_65 {dimension_numbers = #tpu.dot_dimension_numbers<[1], [0], [0], [1], [0, 0, 1, 1], [], []>} : vector<16x128xf32>, vector<128x32xf32>, vector<16x32xf32> -> vector<16x32xf32>
    %186 = vector.broadcast %141 : vector<1x32xf32> to vector<16x32xf32>
    %187 = arith.addf %185, %186 : vector<16x32xf32>
    %c6 = arith.constant 6 : index
    %c0_66 = arith.constant 0 : index
    %188 = vector.load %arg3[%c6, %c0_66] : memref<13x256xf32, #tpu.memory_space<vmem>>, vector<1x32xf32>
    %c7 = arith.constant 7 : index
    %c0_67 = arith.constant 0 : index
    %189 = vector.load %arg3[%c7, %c0_67] : memref<13x256xf32, #tpu.memory_space<vmem>>, vector<1x32xf32>
    %c8 = arith.constant 8 : index
    %c0_68 = arith.constant 0 : index
    %190 = vector.load %arg3[%c8, %c0_68] : memref<13x256xf32, #tpu.memory_space<vmem>>, vector<1x32xf32>
    %c9 = arith.constant 9 : index
    %c0_69 = arith.constant 0 : index
    %191 = vector.load %arg3[%c9, %c0_69] : memref<13x256xf32, #tpu.memory_space<vmem>>, vector<1x32xf32>
    %192 = arith.addf %117, %187 : vector<16x32xf32>
    %cst_70 = arith.constant dense<0.000000e+00> : vector<16xf32>
    %193 = vector.multi_reduction <add>, %192, %cst_70 [1] : vector<16x32xf32> to vector<16xf32>
    %194 = vector.shape_cast %193 : vector<16xf32> to vector<16x1xf32>
    %cst_71 = arith.constant 3.200000e+01 : f32
    %195 = vector.broadcast %cst_71 : f32 to vector<16x1xf32>
    %196 = arith.divf %194, %195 : vector<16x1xf32>
    %197 = vector.broadcast %196 : vector<16x1xf32> to vector<16x32xf32>
    %198 = arith.subf %192, %197 : vector<16x32xf32>
    %199 = arith.mulf %198, %198 : vector<16x32xf32>
    %cst_72 = arith.constant dense<0.000000e+00> : vector<16xf32>
    %200 = vector.multi_reduction <add>, %199, %cst_72 [1] : vector<16x32xf32> to vector<16xf32>
    %201 = vector.shape_cast %200 : vector<16xf32> to vector<16x1xf32>
    %cst_73 = arith.constant 3.200000e+01 : f32
    %202 = vector.broadcast %cst_73 : f32 to vector<16x1xf32>
    %203 = arith.divf %201, %202 : vector<16x1xf32>
    %cst_74 = arith.constant 9.99999974E-6 : f32
    %204 = vector.broadcast %cst_74 : f32 to vector<16x1xf32>
    %205 = arith.addf %203, %204 : vector<16x1xf32>
    %206 = math.rsqrt %205 : vector<16x1xf32>
    %207 = vector.broadcast %206 : vector<16x1xf32> to vector<16x32xf32>
    %208 = arith.mulf %198, %207 : vector<16x32xf32>
    %209 = vector.broadcast %188 : vector<1x32xf32> to vector<16x32xf32>
    %210 = arith.mulf %208, %209 : vector<16x32xf32>
    %211 = vector.broadcast %189 : vector<1x32xf32> to vector<16x32xf32>
    %212 = arith.addf %210, %211 : vector<16x32xf32>
    %c320 = arith.constant 320 : index
    %c0_75 = arith.constant 0 : index
    %213 = vector.load %arg1[%c320, %c0_75] : memref<672x32xf32, #tpu.memory_space<vmem>>, vector<32x32xf32>
    %cst_76 = arith.constant dense<0.000000e+00> : vector<16x32xf32>
    %214 = tpu.matmul %212, %213, %cst_76 {dimension_numbers = #tpu.dot_dimension_numbers<[1], [0], [0], [1], [0, 0, 1, 1], [], []>} : vector<16x32xf32>, vector<32x32xf32>, vector<16x32xf32> -> vector<16x32xf32>
    %215 = arith.mulf %214, %1 : vector<16x32xf32>
    %c352 = arith.constant 352 : index
    %c0_77 = arith.constant 0 : index
    %216 = vector.load %arg1[%c352, %c0_77] : memref<672x32xf32, #tpu.memory_space<vmem>>, vector<32x32xf32>
    %cst_78 = arith.constant dense<0.000000e+00> : vector<16x32xf32>
    %217 = tpu.matmul %212, %216, %cst_78 {dimension_numbers = #tpu.dot_dimension_numbers<[1], [0], [0], [1], [0, 0, 1, 1], [], []>} : vector<16x32xf32>, vector<32x32xf32>, vector<16x32xf32> -> vector<16x32xf32>
    %218 = arith.mulf %217, %2 : vector<16x32xf32>
    %219 = arith.addf %215, %218 : vector<16x32xf32>
    %c384 = arith.constant 384 : index
    %c0_79 = arith.constant 0 : index
    %220 = vector.load %arg1[%c384, %c0_79] : memref<672x32xf32, #tpu.memory_space<vmem>>, vector<32x32xf32>
    %cst_80 = arith.constant dense<0.000000e+00> : vector<16x32xf32>
    %221 = tpu.matmul %212, %220, %cst_80 {dimension_numbers = #tpu.dot_dimension_numbers<[1], [0], [0], [1], [0, 0, 1, 1], [], []>} : vector<16x32xf32>, vector<32x32xf32>, vector<16x32xf32> -> vector<16x32xf32>
    %222 = arith.mulf %221, %1 : vector<16x32xf32>
    %c416 = arith.constant 416 : index
    %c0_81 = arith.constant 0 : index
    %223 = vector.load %arg1[%c416, %c0_81] : memref<672x32xf32, #tpu.memory_space<vmem>>, vector<32x32xf32>
    %cst_82 = arith.constant dense<0.000000e+00> : vector<16x32xf32>
    %224 = tpu.matmul %212, %223, %cst_82 {dimension_numbers = #tpu.dot_dimension_numbers<[1], [0], [0], [1], [0, 0, 1, 1], [], []>} : vector<16x32xf32>, vector<32x32xf32>, vector<16x32xf32> -> vector<16x32xf32>
    %225 = arith.mulf %224, %2 : vector<16x32xf32>
    %226 = arith.addf %222, %225 : vector<16x32xf32>
    %c448 = arith.constant 448 : index
    %c0_83 = arith.constant 0 : index
    %227 = vector.load %arg1[%c448, %c0_83] : memref<672x32xf32, #tpu.memory_space<vmem>>, vector<32x32xf32>
    %cst_84 = arith.constant dense<0.000000e+00> : vector<16x32xf32>
    %228 = tpu.matmul %212, %227, %cst_84 {dimension_numbers = #tpu.dot_dimension_numbers<[1], [0], [0], [1], [0, 0, 1, 1], [], []>} : vector<16x32xf32>, vector<32x32xf32>, vector<16x32xf32> -> vector<16x32xf32>
    %229 = vector.extract_strided_slice %219 {offsets = [0, 0], sizes = [8, 32], strides = [1, 1]} : vector<16x32xf32> to vector<8x32xf32>
    %230 = vector.extract_strided_slice %226 {offsets = [0, 0], sizes = [8, 32], strides = [1, 1]} : vector<16x32xf32> to vector<8x32xf32>
    %231 = vector.extract_strided_slice %228 {offsets = [0, 0], sizes = [8, 32], strides = [1, 1]} : vector<16x32xf32> to vector<8x32xf32>
    %232 = tpu.concatenate %229, %229, %229, %229 in 0 : vector<8x32xf32>, vector<8x32xf32>, vector<8x32xf32>, vector<8x32xf32> -> vector<32x32xf32>
    %233 = arith.mulf %232, %12 : vector<32x32xf32>
    "tpu.trace_start"() <{level = 10 : i32, message = "re,ke->rk"}> : () -> ()
    %cst_85 = arith.constant dense<0.000000e+00> : vector<32x8xf32>
    %234 = tpu.matmul %233, %230, %cst_85 {dimension_numbers = #tpu.dot_dimension_numbers<[1], [1], [0], [0], [0, 0, 1, 0], [], []>} : vector<32x32xf32>, vector<8x32xf32>, vector<32x8xf32> -> vector<32x8xf32>
    %cst_86 = arith.constant -1.000000e+30 : f32
    "tpu.trace_stop"() : () -> ()
    %235 = vector.broadcast %cst_86 : f32 to vector<32x8xf32>
    %236 = arith.select %17, %234, %235 : vector<32x8xi1>, vector<32x8xf32>
    %cst_87 = arith.constant dense<0xFF800000> : vector<32xf32>
    %237 = vector.multi_reduction <maximumf>, %236, %cst_87 [1] : vector<32x8xf32> to vector<32xf32>
    %238 = vector.shape_cast %237 : vector<32xf32> to vector<32x1xf32>
    %239 = vector.broadcast %238 : vector<32x1xf32> to vector<32x8xf32>
    %240 = arith.subf %236, %239 : vector<32x8xf32>
    %241 = math.exp %240 : vector<32x8xf32>
    %cst_88 = arith.constant dense<0.000000e+00> : vector<32xf32>
    %242 = vector.multi_reduction <add>, %241, %cst_88 [1] : vector<32x8xf32> to vector<32xf32>
    %243 = vector.shape_cast %242 : vector<32xf32> to vector<32x1xf32>
    %244 = tpu.reciprocal %243 {approx = true} : vector<32x1xf32> -> vector<32x1xf32>
    %245 = vector.broadcast %244 : vector<32x1xf32> to vector<32x8xf32>
    %246 = arith.mulf %241, %245 : vector<32x8xf32>
    %cst_89 = arith.constant dense<0.000000e+00> : vector<32x32xf32>
    %247 = tpu.matmul %246, %231, %cst_89 {dimension_numbers = #tpu.dot_dimension_numbers<[1], [0], [0], [1], [0, 0, 1, 1], [], []>} : vector<32x8xf32>, vector<8x32xf32>, vector<32x32xf32> -> vector<32x32xf32>
    %248 = arith.mulf %247, %12 : vector<32x32xf32>
    %249 = vector.extract_strided_slice %248 {offsets = [0, 0], sizes = [8, 32], strides = [1, 1]} : vector<32x32xf32> to vector<8x32xf32>
    %250 = vector.extract_strided_slice %248 {offsets = [8, 0], sizes = [8, 32], strides = [1, 1]} : vector<32x32xf32> to vector<8x32xf32>
    %251 = arith.addf %249, %250 : vector<8x32xf32>
    %252 = vector.extract_strided_slice %248 {offsets = [16, 0], sizes = [8, 32], strides = [1, 1]} : vector<32x32xf32> to vector<8x32xf32>
    %253 = arith.addf %251, %252 : vector<8x32xf32>
    %254 = vector.extract_strided_slice %248 {offsets = [24, 0], sizes = [8, 32], strides = [1, 1]} : vector<32x32xf32> to vector<8x32xf32>
    %255 = arith.addf %253, %254 : vector<8x32xf32>
    %256 = vector.extract_strided_slice %219 {offsets = [8, 0], sizes = [8, 32], strides = [1, 1]} : vector<16x32xf32> to vector<8x32xf32>
    %257 = vector.extract_strided_slice %226 {offsets = [8, 0], sizes = [8, 32], strides = [1, 1]} : vector<16x32xf32> to vector<8x32xf32>
    %258 = vector.extract_strided_slice %228 {offsets = [8, 0], sizes = [8, 32], strides = [1, 1]} : vector<16x32xf32> to vector<8x32xf32>
    %259 = tpu.concatenate %256, %256, %256, %256 in 0 : vector<8x32xf32>, vector<8x32xf32>, vector<8x32xf32>, vector<8x32xf32> -> vector<32x32xf32>
    %260 = arith.mulf %259, %12 : vector<32x32xf32>
    "tpu.trace_start"() <{level = 10 : i32, message = "re,ke->rk"}> : () -> ()
    %cst_90 = arith.constant dense<0.000000e+00> : vector<32x8xf32>
    %261 = tpu.matmul %260, %257, %cst_90 {dimension_numbers = #tpu.dot_dimension_numbers<[1], [1], [0], [0], [0, 0, 1, 0], [], []>} : vector<32x32xf32>, vector<8x32xf32>, vector<32x8xf32> -> vector<32x8xf32>
    %cst_91 = arith.constant -1.000000e+30 : f32
    "tpu.trace_stop"() : () -> ()
    %262 = vector.broadcast %cst_91 : f32 to vector<32x8xf32>
    %263 = arith.select %17, %261, %262 : vector<32x8xi1>, vector<32x8xf32>
    %cst_92 = arith.constant dense<0xFF800000> : vector<32xf32>
    %264 = vector.multi_reduction <maximumf>, %263, %cst_92 [1] : vector<32x8xf32> to vector<32xf32>
    %265 = vector.shape_cast %264 : vector<32xf32> to vector<32x1xf32>
    %266 = vector.broadcast %265 : vector<32x1xf32> to vector<32x8xf32>
    %267 = arith.subf %263, %266 : vector<32x8xf32>
    %268 = math.exp %267 : vector<32x8xf32>
    %cst_93 = arith.constant dense<0.000000e+00> : vector<32xf32>
    %269 = vector.multi_reduction <add>, %268, %cst_93 [1] : vector<32x8xf32> to vector<32xf32>
    %270 = vector.shape_cast %269 : vector<32xf32> to vector<32x1xf32>
    %271 = tpu.reciprocal %270 {approx = true} : vector<32x1xf32> -> vector<32x1xf32>
    %272 = vector.broadcast %271 : vector<32x1xf32> to vector<32x8xf32>
    %273 = arith.mulf %268, %272 : vector<32x8xf32>
    %cst_94 = arith.constant dense<0.000000e+00> : vector<32x32xf32>
    %274 = tpu.matmul %273, %258, %cst_94 {dimension_numbers = #tpu.dot_dimension_numbers<[1], [0], [0], [1], [0, 0, 1, 1], [], []>} : vector<32x8xf32>, vector<8x32xf32>, vector<32x32xf32> -> vector<32x32xf32>
    %275 = arith.mulf %274, %12 : vector<32x32xf32>
    %276 = vector.extract_strided_slice %275 {offsets = [0, 0], sizes = [8, 32], strides = [1, 1]} : vector<32x32xf32> to vector<8x32xf32>
    %277 = vector.extract_strided_slice %275 {offsets = [8, 0], sizes = [8, 32], strides = [1, 1]} : vector<32x32xf32> to vector<8x32xf32>
    %278 = arith.addf %276, %277 : vector<8x32xf32>
    %279 = vector.extract_strided_slice %275 {offsets = [16, 0], sizes = [8, 32], strides = [1, 1]} : vector<32x32xf32> to vector<8x32xf32>
    %280 = arith.addf %278, %279 : vector<8x32xf32>
    %281 = vector.extract_strided_slice %275 {offsets = [24, 0], sizes = [8, 32], strides = [1, 1]} : vector<32x32xf32> to vector<8x32xf32>
    %282 = arith.addf %280, %281 : vector<8x32xf32>
    %283 = tpu.concatenate %255, %282 in 0 : vector<8x32xf32>, vector<8x32xf32> -> vector<16x32xf32>
    %c480 = arith.constant 480 : index
    %c0_95 = arith.constant 0 : index
    %284 = vector.load %arg1[%c480, %c0_95] : memref<672x32xf32, #tpu.memory_space<vmem>>, vector<32x32xf32>
    %cst_96 = arith.constant dense<0.000000e+00> : vector<16x32xf32>
    %285 = tpu.matmul %283, %284, %cst_96 {dimension_numbers = #tpu.dot_dimension_numbers<[1], [0], [0], [1], [0, 0, 1, 1], [], []>} : vector<16x32xf32>, vector<32x32xf32>, vector<16x32xf32> -> vector<16x32xf32>
    %286 = arith.addf %192, %285 : vector<16x32xf32>
    %cst_97 = arith.constant dense<0.000000e+00> : vector<16xf32>
    %287 = vector.multi_reduction <add>, %286, %cst_97 [1] : vector<16x32xf32> to vector<16xf32>
    %288 = vector.shape_cast %287 : vector<16xf32> to vector<16x1xf32>
    %cst_98 = arith.constant 3.200000e+01 : f32
    %289 = vector.broadcast %cst_98 : f32 to vector<16x1xf32>
    %290 = arith.divf %288, %289 : vector<16x1xf32>
    %291 = vector.broadcast %290 : vector<16x1xf32> to vector<16x32xf32>
    %292 = arith.subf %286, %291 : vector<16x32xf32>
    %293 = arith.mulf %292, %292 : vector<16x32xf32>
    %cst_99 = arith.constant dense<0.000000e+00> : vector<16xf32>
    %294 = vector.multi_reduction <add>, %293, %cst_99 [1] : vector<16x32xf32> to vector<16xf32>
    %295 = vector.shape_cast %294 : vector<16xf32> to vector<16x1xf32>
    %cst_100 = arith.constant 3.200000e+01 : f32
    %296 = vector.broadcast %cst_100 : f32 to vector<16x1xf32>
    %297 = arith.divf %295, %296 : vector<16x1xf32>
    %cst_101 = arith.constant 9.99999974E-6 : f32
    %298 = vector.broadcast %cst_101 : f32 to vector<16x1xf32>
    %299 = arith.addf %297, %298 : vector<16x1xf32>
    %300 = math.rsqrt %299 : vector<16x1xf32>
    %301 = vector.broadcast %300 : vector<16x1xf32> to vector<16x32xf32>
    %302 = arith.mulf %292, %301 : vector<16x32xf32>
    %303 = vector.broadcast %190 : vector<1x32xf32> to vector<16x32xf32>
    %304 = arith.mulf %302, %303 : vector<16x32xf32>
    %305 = vector.broadcast %191 : vector<1x32xf32> to vector<16x32xf32>
    %306 = arith.addf %304, %305 : vector<16x32xf32>
    %c32_102 = arith.constant 32 : index
    %c0_103 = arith.constant 0 : index
    %307 = vector.load %arg2[%c32_102, %c0_103] : memref<64x128xf32, #tpu.memory_space<vmem>>, vector<32x128xf32>
    %c11 = arith.constant 11 : index
    %c0_104 = arith.constant 0 : index
    %308 = vector.load %arg3[%c11, %c0_104] : memref<13x256xf32, #tpu.memory_space<vmem>>, vector<1x128xf32>
    %c512 = arith.constant 512 : index
    %c0_105 = arith.constant 0 : index
    %309 = vector.load %arg1[%c512, %c0_105] : memref<672x32xf32, #tpu.memory_space<vmem>>, vector<128x32xf32>
    %c10 = arith.constant 10 : index
    %c0_106 = arith.constant 0 : index
    %310 = vector.load %arg3[%c10, %c0_106] : memref<13x256xf32, #tpu.memory_space<vmem>>, vector<1x32xf32>
    %cst_107 = arith.constant dense<0.000000e+00> : vector<16x128xf32>
    %311 = tpu.matmul %306, %307, %cst_107 {dimension_numbers = #tpu.dot_dimension_numbers<[1], [0], [0], [1], [0, 0, 1, 1], [], []>} : vector<16x32xf32>, vector<32x128xf32>, vector<16x128xf32> -> vector<16x128xf32>
    %312 = vector.broadcast %308 : vector<1x128xf32> to vector<16x128xf32>
    %313 = arith.addf %311, %312 : vector<16x128xf32>
    %314 = math.absf %313 : vector<16x128xf32>
    %cst_108 = arith.constant 0.707106769 : f32
    %315 = vector.broadcast %cst_108 : f32 to vector<16x128xf32>
    %316 = arith.mulf %314, %315 : vector<16x128xf32>
    %cst_109 = arith.constant 0.327591091 : f32
    %317 = vector.broadcast %cst_109 : f32 to vector<16x128xf32>
    %318 = arith.mulf %317, %316 : vector<16x128xf32>
    %cst_110 = arith.constant 1.000000e+00 : f32
    %319 = vector.broadcast %cst_110 : f32 to vector<16x128xf32>
    %320 = arith.addf %319, %318 : vector<16x128xf32>
    %cst_111 = arith.constant 1.000000e+00 : f32
    %321 = vector.broadcast %cst_111 : f32 to vector<16x128xf32>
    %322 = arith.divf %321, %320 : vector<16x128xf32>
    %cst_112 = arith.constant 1.06140542 : f32
    %323 = vector.broadcast %cst_112 : f32 to vector<16x128xf32>
    %324 = arith.mulf %323, %322 : vector<16x128xf32>
    %cst_113 = arith.constant 1.45315206 : f32
    %325 = vector.broadcast %cst_113 : f32 to vector<16x128xf32>
    %326 = arith.subf %324, %325 : vector<16x128xf32>
    %327 = arith.mulf %326, %322 : vector<16x128xf32>
    %cst_114 = arith.constant 1.42141378 : f32
    %328 = vector.broadcast %cst_114 : f32 to vector<16x128xf32>
    %329 = arith.addf %327, %328 : vector<16x128xf32>
    %330 = arith.mulf %329, %322 : vector<16x128xf32>
    %cst_115 = arith.constant 0.284496725 : f32
    %331 = vector.broadcast %cst_115 : f32 to vector<16x128xf32>
    %332 = arith.subf %330, %331 : vector<16x128xf32>
    %333 = arith.mulf %332, %322 : vector<16x128xf32>
    %cst_116 = arith.constant 0.254829586 : f32
    %334 = vector.broadcast %cst_116 : f32 to vector<16x128xf32>
    %335 = arith.addf %333, %334 : vector<16x128xf32>
    %336 = arith.mulf %335, %322 : vector<16x128xf32>
    %cst_117 = arith.constant 0.000000e+00 : f32
    %337 = vector.broadcast %cst_117 : f32 to vector<16x128xf32>
    %338 = arith.subf %337, %316 : vector<16x128xf32>
    %339 = arith.mulf %338, %316 : vector<16x128xf32>
    %340 = math.exp %339 : vector<16x128xf32>
    %341 = arith.mulf %336, %340 : vector<16x128xf32>
    %cst_118 = arith.constant 1.000000e+00 : f32
    %342 = vector.broadcast %cst_118 : f32 to vector<16x128xf32>
    %343 = arith.subf %342, %341 : vector<16x128xf32>
    %cst_119 = arith.constant 0.000000e+00 : f32
    %344 = vector.broadcast %cst_119 : f32 to vector<16x128xf32>
    %345 = arith.cmpf oge, %313, %344 : vector<16x128xf32>
    %cst_120 = arith.constant 0.000000e+00 : f32
    %346 = vector.broadcast %cst_120 : f32 to vector<16x128xf32>
    %347 = arith.subf %346, %343 : vector<16x128xf32>
    %348 = arith.select %345, %343, %347 : vector<16x128xi1>, vector<16x128xf32>
    %cst_121 = arith.constant 5.000000e-01 : f32
    %349 = vector.broadcast %cst_121 : f32 to vector<16x128xf32>
    %350 = arith.mulf %349, %313 : vector<16x128xf32>
    %cst_122 = arith.constant 1.000000e+00 : f32
    %351 = vector.broadcast %cst_122 : f32 to vector<16x128xf32>
    %352 = arith.addf %351, %348 : vector<16x128xf32>
    %353 = arith.mulf %350, %352 : vector<16x128xf32>
    %cst_123 = arith.constant dense<0.000000e+00> : vector<16x32xf32>
    %354 = tpu.matmul %353, %309, %cst_123 {dimension_numbers = #tpu.dot_dimension_numbers<[1], [0], [0], [1], [0, 0, 1, 1], [], []>} : vector<16x128xf32>, vector<128x32xf32>, vector<16x32xf32> -> vector<16x32xf32>
    %355 = vector.broadcast %310 : vector<1x32xf32> to vector<16x32xf32>
    %356 = arith.addf %354, %355 : vector<16x32xf32>
    %357 = arith.addf %286, %356 : vector<16x32xf32>
    %c12 = arith.constant 12 : index
    %c0_124 = arith.constant 0 : index
    %358 = vector.load %arg3[%c12, %c0_124] : memref<13x256xf32, #tpu.memory_space<vmem>>, vector<1x256xf32>
    %cst_125 = arith.constant dense<0.000000e+00> : vector<16xf32>
    %359 = vector.multi_reduction <add>, %357, %cst_125 [1] : vector<16x32xf32> to vector<16xf32>
    %360 = vector.shape_cast %359 : vector<16xf32> to vector<16x1xf32>
    %cst_126 = arith.constant 3.200000e+01 : f32
    %361 = vector.broadcast %cst_126 : f32 to vector<16x1xf32>
    %362 = arith.divf %360, %361 : vector<16x1xf32>
    %363 = vector.broadcast %362 : vector<16x1xf32> to vector<16x32xf32>
    %364 = arith.subf %357, %363 : vector<16x32xf32>
    %365 = arith.mulf %364, %364 : vector<16x32xf32>
    %cst_127 = arith.constant dense<0.000000e+00> : vector<16xf32>
    %366 = vector.multi_reduction <add>, %365, %cst_127 [1] : vector<16x32xf32> to vector<16xf32>
    %367 = vector.shape_cast %366 : vector<16xf32> to vector<16x1xf32>
    %cst_128 = arith.constant 3.200000e+01 : f32
    %368 = vector.broadcast %cst_128 : f32 to vector<16x1xf32>
    %369 = arith.divf %367, %368 : vector<16x1xf32>
    %cst_129 = arith.constant 9.99999974E-6 : f32
    %370 = vector.broadcast %cst_129 : f32 to vector<16x1xf32>
    %371 = arith.addf %369, %370 : vector<16x1xf32>
    %372 = math.rsqrt %371 : vector<16x1xf32>
    %373 = vector.broadcast %372 : vector<16x1xf32> to vector<16x32xf32>
    %374 = arith.mulf %364, %373 : vector<16x32xf32>
    %c0_130 = arith.constant 0 : index
    %c0_131 = arith.constant 0 : index
    %375 = vector.load %arg4[%c0_130, %c0_131] : memref<32x256xf32, #tpu.memory_space<vmem>>, vector<32x256xf32>
    %cst_132 = arith.constant dense<0.000000e+00> : vector<16x256xf32>
    %376 = tpu.matmul %374, %375, %cst_132 {dimension_numbers = #tpu.dot_dimension_numbers<[1], [0], [0], [1], [0, 0, 1, 1], [], []>} : vector<16x32xf32>, vector<32x256xf32>, vector<16x256xf32> -> vector<16x256xf32>
    %377 = vector.broadcast %358 : vector<1x256xf32> to vector<16x256xf32>
    %378 = arith.addf %376, %377 : vector<16x256xf32>
    %c0_133 = arith.constant 0 : index
    %c0_134 = arith.constant 0 : index
    %379 = vector.load %arg5[%c0_133, %c0_134] : memref<16x256xf32, #tpu.memory_space<vmem>>, vector<16x256xf32>
    tpu.vector_store %arg5[%c0_133, %c0_134], %378 {strides = array<i32>} : memref<16x256xf32, #tpu.memory_space<vmem>>, vector<16x256xf32>,
    return
  }
}

</mosaic_0001>

<bundles_post_ra>
// kernel: alpha_forward.1
= control target key start
LH: loop header
LB: loop body
LE: loop exit
PB: predicated region body
PF: predicated region fallthrough
CT: control target
= control target key end

     0   :  { %vm61_vm0 = vcmask 261120   ;;  %s4360_s0 = inlined_call_operand.vmem [shape: f32[16,32], index: 0, kind: input, shape index: {}]   ;;  %s4361_s1 = inlined_call_operand.vmem [shape: f32[672,32], index: 1, kind: input, shape index: {}]   ;;  %s4362_s2 = inlined_call_operand.vmem [shape: f32[64,128], index: 2, kind: input, shape index: {}]   ;;  %s4363_s3 = inlined_call_operand.vmem [shape: f32[13,256], index: 3, kind: input, shape index: {}]   ;;  %s4364_s4 = inlined_call_operand.vmem [shape: f32[32,256], index: 4, kind: input, shape index: {}]   ;;  %s4365_s5 = inlined_call_operand.hbm [shape: f32[16,256], index: 5, kind: output, shape index: {}]  }
   0x1   :  { %v3702_v0 = vld [vmem:[%s4360_s0] sm:$0xff]  ;;  %v3707_v1 = vld [vmem:[%s4360_s0 + $0x8] sm:$0xff] }
   0x2   :  { %10 = vsyncpa [#allocation3], 0  ;;  %v62_v2 = vsel %vm61_vm0, %v3702_v0, 0.0  ;;  %v65_v3 = vsel %vm61_vm0, %v3707_v1, 0.0  ;;  %v93_v14 = vld [vmem:[%s4361_s1] sm:$0xff]  ;;  %v94_v15 = vld [vmem:[%s4361_s1 + $0x8] sm:$0xff]  ;;  %v27_v60 = vlaneseq }
   0x3   :  { %63 = vadd.xlane.f32.xlu0 %v62_v2  ;;  %v263_v16 = vld [vmem:[%s4361_s1 + $0x40] sm:$0xff]  ;;  %v3353_v17 = vpack.c.bf16 %v94_v15, %v93_v14  ;;  %v264_v18 = vld [vmem:[%s4361_s1 + $0x48] sm:$0xff]  ;;  %v95_v20 = vld [vmem:[%s4361_s1 + $0x10] sm:$0xff]  ;;  %vm614_vm7 = vcmask 64512  }
   0x4   :  { %v3369_v19 = vpack.c.bf16 %v264_v18, %v263_v16  ;;  %v96_v21 = vld [vmem:[%s4361_s1 + $0x18] sm:$0xff]  ;;  %v265_v22 = vld [vmem:[%s4361_s1 + $0x50] sm:$0xff]  ;;  %v180_v26 = vld [vmem:[%s4361_s1 + $0x20] sm:$0xff]  ;;  %v3793_v63 = vand.u32 127, %v27_v60 }
   0x5   :  { %3354 = vmatprep.subr.bf16.mxu1 %v3353_v17  ;;  %v3357_v23 = vpack.c.bf16 %v96_v21, %v95_v20  ;;  %v266_v24 = vld [vmem:[%s4361_s1 + $0x58] sm:$0xff]  ;;  %v181_v27 = vld [vmem:[%s4361_s1 + $0x28] sm:$0xff]  ;;  %v427_v28 = vld [vmem:[%s4361_s1 + $0x80] sm:$0xff]  ;;  %v3665_v21 = vmov 0.0  }
   0x6   :  { %3370 = vmatprep.subr.bf16.mxu0 %v3369_v19  ;;  %3356 = vmatpush3.bf16.msra.mxu1 %v3353_v17  ;;  %v3373_v25 = vpack.c.bf16 %v266_v24, %v265_v22  ;;  %v3361_v29 = vpack.c.bf16 %v181_v27, %v180_v26  ;;  %v428_v30 = vld [vmem:[%s4361_s1 + $0x88] sm:$0xff]  ;;  %v55_v39 = vld [vmem:[%s4363_s3] ss:$0 sm:$0xff]  ;;  %v56_v41 = vld [vmem:[%s4363_s3 + $0x1] ss:$0 sm:$0xff] }
   0x7   :  { %66 = vadd.xlane.f32.xlu0 %v65_v3  ;;  %3372 = vmatpush3.bf16.msra.mxu0 %v3369_v19  ;;  %v3385_v31 = vpack.c.bf16 %v428_v30, %v427_v28  ;;  %v182_v46 = vld [vmem:[%s4361_s1 + $0x30] sm:$0xff]  ;;  %v183_v48 = vld [vmem:[%s4361_s1 + $0x38] sm:$0xff]  ;;  %v344_v54 = vld [vmem:[%s4361_s1 + $0x60] sm:$0xff] }
   0x8   :  { %3358 = vmatprep.subr.bf16.mxu1 %v3357_v23  ;;  %3374 = vmatprep.subr.bf16.mxu0 %v3373_v25  ;;  %v429_v49 = vld [vmem:[%s4361_s1 + $0x90] sm:$0xff]  ;;  %v430_v50 = vld [vmem:[%s4361_s1 + $0x98] sm:$0xff]  ;;  %v3365_v52 = vpack.c.bf16 %v183_v48, %v182_v46  ;;  %v345_v55 = vld [vmem:[%s4361_s1 + $0x68] sm:$0xff] }
   0x9   :  { %v3389_v53 = vpack.c.bf16 %v430_v50, %v429_v49  ;;  %v3377_v56 = vpack.c.bf16 %v345_v55, %v344_v54  ;;  %v346_v57 = vld [vmem:[%s4361_s1 + $0x70] sm:$0xff]  ;;  %v347_v58 = vld [vmem:[%s4361_s1 + $0x78] sm:$0xff] }
   0xa   :  { %3360 = vmatpush3.bf16.msra.mxu1 %v3357_v23  ;;  %v3381_v59 = vpack.c.bf16 %v347_v58, %v346_v57 }
   0xb   :  { %3376 = vmatpush3.bf16.msra.mxu0 %v3373_v25  ;;  %3362 = vmatprep.subr.bf16.mxu1 %v3361_v29 }
   0xc   :  { %3386 = vmatprep.subr.bf16.mxu0 %v3385_v31 }
  0x90   :  { %v64_v4 = vpop.xlane.xlu0 %63 }
  0x91   :  { %v69_v5 = vmul.f32 0.03125, %v64_v4  ;;  %v3795_v4 = vshrl.u32 %v27_v60, 7 }
  0x93   :  { %v71_v6 = vsub.f32 %v3702_v0, %v69_v5  ;;  %v38_v5 = vshra.s32 %v3793_v63, 3  ;;  %v29_v18 = vadd.s32 8, %v3795_v4  ;;  %v30_v23 = vadd.s32 16, %v3795_v4 }
  0x94   :  { %v67_v7 = vpop.xlane.xlu0 %66  ;;  %v31_v27 = vadd.s32 24, %v3795_v4  ;;  %v47_v49 = vand.u32 7, %v3795_v4 }
  0x95   :  { %v70_v8 = vmul.f32 0.03125, %v67_v7  ;;  %v73_v9 = vmul.f32 %v71_v6, %v71_v6  ;;  %v3802_v7 = vld [vmem:[%s4361_s1 + $0x288] sm:$0xff]  ;;  %v35_v25 = vshra.s32 %v29_v18, 3  ;;  %v36_v28 = vshra.s32 %v30_v23, 3 }
  0x96   :  { %v48_v48 = vand.u32 7, %v29_v18  ;;  %vm3872_vm6 = vcmp.le.s32.totalorder %v3793_v63, %v47_v49 }
  0x97   :  { %v72_v10 = vsub.f32 %v3707_v1, %v70_v8  ;;  %v75_v11 = vsel %vm61_vm0, %v73_v9, 0.0  ;;  %v3807_v8 = vld [vmem:[%s4361_s1 + $0x298] sm:$0xff]  ;;  %v3812_v9 = vld [vmem:[%s4361_s1 + $0x280] sm:$0xff]  ;;  %vm40_vm2 = vcmp.eq.s32.totalorder %v35_v25, %v38_v5  ;;  %vm41_vm3 = vcmp.eq.s32.totalorder %v36_v28, %v38_v5 }
  0x98   :  { %76 = vadd.xlane.f32.xlu1 %v75_v11  ;;  %vm3867_vm5 = vcmp.le.s32.totalorder %v3793_v63, %v48_v48 }
  0x99   :  { %v74_v12 = vmul.f32 %v72_v10, %v72_v10 }
  0x9b   :  { %v78_v13 = vsel %vm61_vm0, %v74_v12, 0.0 }
  0x9c   :  { %79 = vadd.xlane.f32.xlu1 %v78_v13 }
 0x125   :  { %v77_v32 = vpop.xlane.xlu1 %76 }
 0x126   :  { %v81_v33 = vmul.f32 0.03125, %v77_v32 }
 0x128   :  { %v83_v34 = vadd.f32 1e-05, %v81_v33 }
 0x129   :  { %v80_v35 = vpop.xlane.xlu1 %79 }
 0x12a   :  { %3541 = vrsqrt.f32 %v83_v34  ;;  %v82_v36 = vmul.f32 0.03125, %v80_v35  ;;  %v37_v35 = vshra.s32 %v31_v27, 3 }
 0x12c   :  { %v84_v37 = vadd.f32 1e-05, %v82_v36  ;;  %vm42_vm4 = vcmp.eq.s32.totalorder %v37_v35, %v38_v5 }
 0x12e   :  { %3543 = vrsqrt.f32 %v84_v37 }
 0x134   :  { %v3542_v38 = vpop.eup %3541 }
 0x135   :  { %v87_v40 = vmul.f32 %v3542_v38, %v71_v6  ;;  %v34_v6 = vshra.s32 %v3795_v4, 3  ;;  %v3839_v38 = vsel %vm40_vm2, 1.0, %v3665_v21 }
 0x137   :  { %v89_v42 = vmul.f32 %v87_v40, %v55_v39  ;;  %vm39_vm1 = vcmp.eq.s32.totalorder %v34_v6, %v38_v5 }
 0x138   :  { %v3544_v43 = vpop.eup %3543  ;;  %v3827_v22 = vsel %vm39_vm1, 1.0, %v3665_v21 }
 0x139   :  { %v88_v44 = vmul.f32 %v3544_v43, %v72_v10  ;;  %v91_v45 = vadd.f32 %v89_v42, %v56_v41  ;;  %v3817_v10 = vld [vmem:[%s4361_s1 + $0x290] sm:$0xff]  ;;  %v3850_v42 = vsel %vm42_vm4, 1.0, %v3665_v21 }
 0x13b   :  { %3073 = vmatprep.mubr.msk.f32.mxu1 %vm61_vm0, %v91_v45  ;;  %3095 = vmatprep.mubr.msk.f32.mxu0 %vm61_vm0, %v91_v45  ;;  %v90_v47 = vmul.f32 %v88_v44, %v55_v39  ;;  %v3843_v39 = vsel %vm41_vm3, 1.0, %v3665_v21 }
 0x13d   :  { %v92_v51 = vadd.f32 %v90_v47, %v56_v41 }
 0x13f   :  { %3074 = vmatmul.mubr.msk.f32.vlgmr.msra.gmra.mrb[0].mxu1 %vm61_vm0, %v92_v51  ;;  %3096 = vmatmul.mubr.msk.f32.vlgmr.msra.gmra.mrb[0].mxu0 %vm61_vm0, %v92_v51 }
 0x140   :  { %3364 = vmatpush3.bf16.msra.mxu1 %v3361_v29  ;;  %3388 = vmatpush3.bf16.msra.mxu0 %v3385_v31 }
 0x141   :  { %3084 = vmatprep.mubr.msk.f32.mxu1 %vm61_vm0, %v91_v45  ;;  %3117 = vmatprep.mubr.msk.f32.mxu0 %vm61_vm0, %v91_v45 }
 0x142   :  { %3366 = vmatprep.subr.bf16.mxu1 %v3365_v52  ;;  %3390 = vmatprep.subr.bf16.mxu0 %v3389_v53 }
 0x144   :  { %3368 = vmatpush3.bf16.msra.mxu1 %v3365_v52  ;;  %3392 = vmatpush3.bf16.msra.mxu0 %v3389_v53  ;;  %v49_v53 = vand.u32 7, %v30_v23 }
 0x145   :  { %3378 = vmatprep.subr.bf16.mxu1 %v3377_v56 }
 0x146   :  { %vm3888_vm9 = vcmp.le.s32.totalorder %v3793_v63, %v49_v53 }
 0x147   :  { %3085 = vmatmul.mubr.msk.f32.vlgmr.msra.gmra.mrb[2].mxu1 %vm61_vm0, %v92_v51  ;;  %3118 = vmatmul.mubr.msk.f32.vlgmr.msra.gmra.mrb[2].mxu0 %vm61_vm0, %v92_v51 }
 0x148   :  { %3380 = vmatpush3.bf16.msra.mxu1 %v3377_v56  ;;  %3106 = vmatprep.mubr.msk.f32.mxu1 %vm61_vm0, %v91_v45 }
 0x149   :  { %3382 = vmatprep.subr.bf16.mxu1 %v3381_v59 }
 0x14c   :  { %3384 = vmatpush3.bf16.msra.mxu1 %v3381_v59 }
 0x14f   :  { %3107 = vmatmul.mubr.msk.f32.vlgmr.msra.gmra.mrb[4].mxu1 %vm61_vm0, %v92_v51  ;;  %v50_v51 = vand.u32 7, %v31_v27 }
 0x151   :  { %vm3882_vm8 = vcmp.le.s32.totalorder %v3793_v63, %v50_v51 }
 0x212   :  { %v3075_v61 = vpop.f32.mrb[0].mxu1  ;;  %v3097_v62 = vpop.f32.mrb[0].mxu0 }
 0x213   :  { %v169_v2 = vpop.f32.mrb[1].mxu1  ;;  %v333_v3 = vpop.f32.mrb[1].mxu0  ;;  %v179_v13 = vmul.f32 %v3075_v61, %v3802_v7  ;;  %v343_v30 = vmul.f32 %v3097_v62, %v3802_v7 }
 0x214   :  { %v178_v17 = vmul.f32 %v169_v2, %v3812_v9  ;;  %v342_v33 = vmul.f32 %v333_v3, %v3812_v9 }
 0x21a   :  { %v3086_v11 = vpop.f32.mrb[2].mxu1  ;;  %v3819_v12 = vpop.f32.mrb[2].mxu0 }
 0x21b   :  { %v260_v14 = vmul.f32 %v3086_v11, %v3807_v8  ;;  %v250_v15 = vpop.f32.mrb[3].mxu1  ;;  %v497_v16 = vpop.f32.mrb[3].mxu0 }
 0x21c   :  { %v259_v19 = vmul.f32 %v250_v15, %v3817_v10  ;;  %3128 = vmatprep.subr.mxu0 %v497_v16 }
 0x21d   :  { %v262_v20 = vadd.f32 %v260_v14, %v179_v13  ;;  %3129 = vmatpush3.msra.mxu0 %v497_v16 }
 0x21e   :  { %v261_v24 = vadd.f32 %v259_v19, %v178_v17  ;;  %3144 = vmatprep.subr.mxu0 %v3819_v12 }
 0x21f   :  { %v763_v44 = vmul.f32 %v262_v20, %v3827_v22  ;;  %v764_v45 = vmul.f32 %v262_v20, %v3839_v38  ;;  %v765_v46 = vmul.f32 %v262_v20, %v3843_v39  ;;  %v766_v47 = vmul.f32 %v262_v20, %v3850_v42 }
 0x220   :  { %v506_v26 = vmul.f32 %v261_v24, %v3827_v22  ;;  %v507_v40 = vmul.f32 %v261_v24, %v3839_v38  ;;  %v508_v41 = vmul.f32 %v261_v24, %v3843_v39  ;;  %v509_v43 = vmul.f32 %v261_v24, %v3850_v42 }
 0x222   :  { %v3108_v29 = vpop.f32.mrb[4].mxu1  ;;  %3122 = vmatprep.mubr.msk.f32.mxu1 %vm61_vm0, %v506_v26 }
 0x223   :  { %v424_v31 = vmul.f32 %v3108_v29, %v3807_v8  ;;  %v414_v32 = vpop.f32.mrb[5].mxu1 }
 0x224   :  { %v423_v34 = vmul.f32 %v414_v32, %v3817_v10 }
 0x225   :  { %v426_v36 = vadd.f32 %v424_v31, %v343_v30 }
 0x226   :  { %v425_v37 = vadd.f32 %v423_v34, %v342_v33 }
 0x228   :  { %3120 = vmatprep.subr.msk.mxu1 %vm61_vm0, %v425_v37 }
 0x229   :  { %3121 = vmatpush3.xpose.msk.msra.mxu1 %vm61_vm0, %v425_v37 }
 0x22a   :  { %3136 = vmatprep.subr.msk.mxu1 %vm61_vm0, %v426_v36 }
 0x22c   :  { %3123 = vmatmul.mubr.msk.f32.vlgmr.msra.gmra.mrb[6].mxu1 %vm61_vm0, %v507_v40 }
 0x22d   :  { %3125 = vmatprep.mubr.msk.f32.mxu1 %vm61_vm0, %v508_v41  ;;  %3137 = vmatpush3.xpose.msk.msra.mxu1 %vm61_vm0, %v426_v36 }
 0x230   :  { %3126 = vmatmul.mubr.msk.f32.gmra.mrb[8].mxu1 %vm61_vm0, %v509_v43 }
 0x231   :  { %3138 = vmatprep.mubr.msk.f32.mxu1 %vm61_vm0, %v763_v44 }
 0x234   :  { %3139 = vmatmul.mubr.msk.f32.vlgmr.msra.gmra.mrb[10].mxu1 %vm61_vm0, %v764_v45 }
 0x235   :  { %3141 = vmatprep.mubr.msk.f32.mxu1 %vm61_vm0, %v765_v46 }
 0x238   :  { %3142 = vmatmul.mubr.msk.f32.gmra.mrb[12].mxu1 %vm61_vm0, %v766_v47 }
 0x2ff   :  { %v3124_v54 = vpop.f32.mrb[6].mxu1 }
 0x300   :  { %v611_v55 = vsel %vm3867_vm5, %v3124_v54, -1e+30  ;;  %v591_v56 = vpop.f32.mrb[7].mxu1 }
 0x301   :  { %v610_v57 = vsel %vm3872_vm6, %v591_v56, -1e+30  ;;  %v618_v58 = vsel %vm614_vm7, %v611_v55, -inf }
 0x302   :  { %619 = vmax.xlane.f32.xlu1 %v618_v58  ;;  %v615_v60 = vsel %vm614_vm7, %v610_v57, -inf }
 0x303   :  { %616 = vmax.xlane.f32.xlu0 %v615_v60  ;;  %v3127_v62 = vpop.f32.mrb[8].mxu1 }
 0x304   :  { %v613_v2 = vsel %vm3882_vm8, %v3127_v62, -1e+30  ;;  %v601_v3 = vpop.f32.mrb[9].mxu1 }
 0x305   :  { %v612_v5 = vsel %vm3888_vm9, %v601_v3, -1e+30  ;;  %v624_v6 = vsel %vm614_vm7, %v613_v2, -inf }
 0x306   :  { %625 = vmax.xlane.f32.xlu1 %v624_v6  ;;  %v621_v11 = vsel %vm614_vm7, %v612_v5, -inf }
 0x307   :  { %v3140_v13 = vpop.f32.mrb[10].mxu1  ;;  %622 = vmax.xlane.f32.xlu0 %v621_v11 }
 0x308   :  { %v868_v63 = vsel %vm3867_vm5, %v3140_v13, -1e+30  ;;  %v848_v14 = vpop.f32.mrb[11].mxu1 }
 0x309   :  { %v867_v15 = vsel %vm3872_vm6, %v848_v14, -1e+30  ;;  %v874_v16 = vsel %vm614_vm7, %v868_v63, -inf }
 0x30a   :  { %875 = vmax.xlane.f32.xlu1 %v874_v16  ;;  %v871_v17 = vsel %vm614_vm7, %v867_v15, -inf }
 0x30b   :  { %v3143_v18 = vpop.f32.mrb[12].mxu1  ;;  %872 = vmax.xlane.f32.xlu0 %v871_v17 }
 0x30c   :  { %v870_v19 = vsel %vm3882_vm8, %v3143_v18, -1e+30  ;;  %v858_v20 = vpop.f32.mrb[13].mxu1 }
 0x30d   :  { %v869_v23 = vsel %vm3888_vm9, %v858_v20, -1e+30  ;;  %v880_v24 = vsel %vm614_vm7, %v870_v19, -inf }
 0x30e   :  { %881 = vmax.xlane.f32.xlu1 %v880_v24  ;;  %v877_v25 = vsel %vm614_vm7, %v869_v23, -inf }
 0x30f   :  { %878 = vmax.xlane.f32.xlu0 %v877_v25 }
 0x38f   :  { %v620_v26 = vpop.xlane.xlu1 %619 }
 0x390   :  { %v628_v27 = vsub.f32 %v611_v55, %v620_v26  ;;  %v617_v28 = vpop.xlane.xlu0 %616 }
 0x391   :  { %v627_v29 = vsub.f32 %v610_v57, %v617_v28 }
 0x392   :  { %v633_v30 = vmul.f32 1.442695, %v628_v27 }
 0x393   :  { %v631_v31 = vmul.f32 1.442695, %v627_v29  ;;  %v626_v32 = vpop.xlane.xlu1 %625 }
 0x394   :  { %3545 = vpow2.f32 %v633_v30  ;;  %v630_v33 = vsub.f32 %v613_v2, %v626_v32  ;;  %v623_v34 = vpop.xlane.xlu0 %622 }
 0x395   :  { %3547 = vpow2.f32 %v631_v31  ;;  %v629_v35 = vsub.f32 %v612_v5, %v623_v34 }
 0x396   :  { %v637_v36 = vmul.f32 1.442695, %v630_v33 }
 0x397   :  { %v635_v37 = vmul.f32 1.442695, %v629_v35  ;;  %v876_v40 = vpop.xlane.xlu1 %875 }
 0x398   :  { %3549 = vpow2.f32 %v637_v36  ;;  %v884_v41 = vsub.f32 %v868_v63, %v876_v40  ;;  %v873_v43 = vpop.xlane.xlu0 %872 }
 0x399   :  { %3551 = vpow2.f32 %v635_v37  ;;  %v883_v44 = vsub.f32 %v867_v15, %v873_v43 }
 0x39a   :  { %v889_v45 = vmul.f32 1.442695, %v884_v41 }
 0x39b   :  { %v887_v46 = vmul.f32 1.442695, %v883_v44  ;;  %v882_v47 = vpop.xlane.xlu1 %881 }
 0x39c   :  { %3553 = vpow2.f32 %v889_v45  ;;  %v886_v48 = vsub.f32 %v870_v19, %v882_v47  ;;  %v879_v49 = vpop.xlane.xlu0 %878 }
 0x39d   :  { %3555 = vpow2.f32 %v887_v46  ;;  %v885_v51 = vsub.f32 %v869_v23, %v879_v49  ;;  %v1020_v46 = vld [vmem:[%s4361_s1 + $0xa8] sm:$0xff]  ;;  %v1022_v49 = vld [vmem:[%s4361_s1 + $0xb8] sm:$0xff] }
 0x39e   :  { %v3546_v53 = vpop.eup %3545  ;;  %v893_v54 = vmul.f32 1.442695, %v886_v48  ;;  %v1021_v48 = vld [vmem:[%s4361_s1 + $0xb0] sm:$0xff] }
 0x39f   :  { %v3548_v55 = vpop.eup %3547  ;;  %v891_v56 = vmul.f32 1.442695, %v885_v51  ;;  %v642_v57 = vsel %vm614_vm7, %v3546_v53, 0.0  ;;  %v3397_v51 = vpack.c.bf16 %v1022_v49, %v1021_v48 }
 0x3a0   :  { %3557 = vpow2.f32 %v893_v54  ;;  %643 = vadd.xlane.f32.xlu1 %v642_v57  ;;  %v639_v58 = vsel %vm614_vm7, %v3548_v55, 0.0 }
 0x3a1   :  { %3559 = vpow2.f32 %v891_v56  ;;  %640 = vadd.xlane.f32.xlu0 %v639_v58 }
 0x3a2   :  { %v3550_v60 = vpop.eup %3549 }
 0x3a3   :  { %v3552_v62 = vpop.eup %3551  ;;  %v648_v2 = vsel %vm614_vm7, %v3550_v60, 0.0 }
 0x3a4   :  { %649 = vadd.xlane.f32.xlu1 %v648_v2  ;;  %v645_v3 = vsel %vm614_vm7, %v3552_v62, 0.0 }
 0x3a5   :  { %646 = vadd.xlane.f32.xlu0 %v645_v3 }
 0x3a6   :  { %v3554_v5 = vpop.eup %3553 }
 0x3a7   :  { %v3556_v6 = vpop.eup %3555  ;;  %v898_v11 = vsel %vm614_vm7, %v3554_v5, 0.0 }
 0x3a8   :  { %899 = vadd.xlane.f32.xlu1 %v898_v11  ;;  %v895_v13 = vsel %vm614_vm7, %v3556_v6, 0.0 }
 0x3a9   :  { %896 = vadd.xlane.f32.xlu0 %v895_v13 }
 0x3aa   :  { %v3558_v63 = vpop.eup %3557 }
 0x3ab   :  { %v3560_v14 = vpop.eup %3559  ;;  %v904_v15 = vsel %vm614_vm7, %v3558_v63, 0.0 }
 0x3ac   :  { %905 = vadd.xlane.f32.xlu1 %v904_v15  ;;  %v901_v16 = vsel %vm614_vm7, %v3560_v14, 0.0 }
 0x3ad   :  { %902 = vadd.xlane.f32.xlu0 %v901_v16 }
 0x42d   :  { %v644_v17 = vpop.xlane.xlu1 %643 }
 0x42e   :  { %3561 = vrcp.f32 %v644_v17  ;;  %v641_v18 = vpop.xlane.xlu0 %640 }
 0x42f   :  { %3563 = vrcp.f32 %v641_v18 }
 0x431   :  { %v650_v19 = vpop.xlane.xlu1 %649 }
 0x432   :  { %3565 = vrcp.f32 %v650_v19  ;;  %v647_v20 = vpop.xlane.xlu0 %646 }
 0x433   :  { %3567 = vrcp.f32 %v647_v20 }
 0x435   :  { %v900_v23 = vpop.xlane.xlu1 %899 }
 0x436   :  { %3569 = vrcp.f32 %v900_v23  ;;  %v897_v24 = vpop.xlane.xlu0 %896 }
 0x437   :  { %3571 = vrcp.f32 %v897_v24 }
 0x438   :  { %v3562_v25 = vpop.eup %3561 }
 0x439   :  { %v3564_v26 = vpop.eup %3563  ;;  %v906_v27 = vpop.xlane.xlu1 %905  ;;  %v656_v30 = vmul.f32 %v3562_v25, %v3546_v53 }
 0x43a   :  { %3573 = vrcp.f32 %v906_v27  ;;  %v903_v28 = vpop.xlane.xlu0 %902  ;;  %v655_v29 = vmul.f32 %v3564_v26, %v3548_v55 }
 0x43b   :  { %3575 = vrcp.f32 %v903_v28 }
 0x43c   :  { %v3566_v31 = vpop.eup %3565  ;;  %3130 = vmatprep.mubr.msk.f32.mxu0 %vm614_vm7, %v655_v29 }
 0x43d   :  { %v3568_v32 = vpop.eup %3567  ;;  %3131 = vmatmul.mubr.msk.f32.vlgmr.msra.gmra.mrb[4].mxu0 %vm614_vm7, %v656_v30  ;;  %v658_v34 = vmul.f32 %v3566_v31, %v3550_v60 }
 0x43e   :  { %3145 = vmatpush3.msra.mxu0 %v3819_v12  ;;  %v657_v33 = vmul.f32 %v3568_v32, %v3552_v62  ;;  %v1019_v12 = vld [vmem:[%s4361_s1 + $0xa0] sm:$0xff] }
 0x43f   :  { %v3393_v47 = vpack.c.bf16 %v1020_v46, %v1019_v12 }
 0x440   :  { %v3570_v35 = vpop.eup %3569  ;;  %3133 = vmatprep.mubr.msk.f32.mxu0 %vm614_vm7, %v657_v33 }
 0x441   :  { %v3572_v36 = vpop.eup %3571  ;;  %3134 = vmatmul.mubr.msk.f32.gmra.mrb[6].mxu0 %vm614_vm7, %v658_v34  ;;  %v912_v40 = vmul.f32 %v3570_v35, %v3554_v5  ;;  %3394 = vmatprep.subr.bf16.mxu1 %v3393_v47 }
 0x442   :  { %v911_v37 = vmul.f32 %v3572_v36, %v3556_v6  ;;  %3396 = vmatpush3.bf16.msra.mxu1 %v3393_v47 }
 0x443   :  { %3398 = vmatprep.subr.bf16.mxu1 %v3397_v51 }
 0x444   :  { %v3574_v41 = vpop.eup %3573  ;;  %3146 = vmatprep.mubr.msk.f32.mxu0 %vm614_vm7, %v911_v37  ;;  %v1136_v37 = vld [vmem:[%s4362_s2] sm:$0xff] }
 0x445   :  { %v3576_v43 = vpop.eup %3575  ;;  %3147 = vmatmul.mubr.msk.f32.vlgmr.msra.gmra.mrb[8].mxu0 %vm614_vm7, %v912_v40  ;;  %v914_v45 = vmul.f32 %v3574_v41, %v3558_v63  ;;  %v1137_v40 = vld [vmem:[%s4362_s2 + $0x8] sm:$0xff] }
 0x446   :  { %v913_v44 = vmul.f32 %v3576_v43, %v3560_v14  ;;  %3400 = vmatpush3.bf16.msra.mxu1 %v3397_v51  ;;  %v3401_v41 = vpack.c.bf16 %v1137_v40, %v1136_v37  ;;  %v1138_v43 = vld [vmem:[%s4362_s2 + $0x10] sm:$0xff] }
 0x448   :  { %3149 = vmatprep.mubr.msk.f32.mxu0 %vm614_vm7, %v913_v44  ;;  %v1139_v44 = vld [vmem:[%s4362_s2 + $0x18] sm:$0xff]  ;;  %3402 = vmatprep.subr.bf16.mxu0 %v3401_v41 }
 0x449   :  { %3150 = vmatmul.mubr.msk.f32.gmra.mrb[10].mxu0 %vm614_vm7, %v914_v45  ;;  %v3405_v45 = vpack.c.bf16 %v1139_v44, %v1138_v43 }
 0x44a   :  { %3404 = vmatpush3.bf16.msra.mxu0 %v3401_v41 }
 0x44b   :  { %3406 = vmatprep.subr.bf16.mxu0 %v3405_v45 }
 0x44e   :  { %3408 = vmatpush3.bf16.msra.mxu0 %v3405_v45 }
 0x510   :  { %v3132_v53 = vpop.f32.mrb[4].mxu0 }
 0x511   :  { %v757_v54 = vmul.f32 %v3132_v53, %v3839_v38  ;;  %v737_v55 = vpop.f32.mrb[5].mxu0 }
 0x512   :  { %v756_v56 = vmul.f32 %v737_v55, %v3827_v22 }
 0x514   :  { %v760_v57 = vadd.f32 %v757_v54, %v756_v56  ;;  %v3135_v58 = vpop.f32.mrb[6].mxu0  ;;  %v57_v54 = vld [vmem:[%s4363_s3 + $0x2] ss:$0 sm:$0xff] }
 0x515   :  { %v747_v60 = vpop.f32.mrb[7].mxu0  ;;  %v759_v2 = vmul.f32 %v3135_v58, %v3850_v42  ;;  %v58_v58 = vld [vmem:[%s4363_s3 + $0x3] ss:$0 sm:$0xff] }
 0x516   :  { %v758_v62 = vmul.f32 %v747_v60, %v3843_v39 }
 0x518   :  { %v761_v3 = vadd.f32 %v760_v57, %v758_v62  ;;  %v3148_v5 = vpop.f32.mrb[8].mxu0 }
 0x519   :  { %v1013_v6 = vmul.f32 %v3148_v5, %v3839_v38  ;;  %v993_v11 = vpop.f32.mrb[9].mxu0  ;;  %v1141_v5 = vld [vmem:[%s4361_s1 + $0xc0] sm:$0xff] }
 0x51a   :  { %v762_v13 = vadd.f32 %v761_v3, %v759_v2  ;;  %v1012_v63 = vmul.f32 %v993_v11, %v3827_v22 }
 0x51c   :  { %v1016_v14 = vadd.f32 %v1013_v6, %v1012_v63  ;;  %v3151_v15 = vpop.f32.mrb[10].mxu0  ;;  %3160 = vmatprep.mubr.msk.f32.mxu1 %vm61_vm0, %v762_v13  ;;  %v1142_v6 = vld [vmem:[%s4361_s1 + $0xc8] sm:$0xff]  ;;  %v1143_v13 = vld [vmem:[%s4361_s1 + $0xd0] sm:$0xff]  ;;  %v1144_v63 = vld [vmem:[%s4361_s1 + $0xd8] sm:$0xff] }
 0x51d   :  { %v1003_v16 = vpop.f32.mrb[11].mxu0  ;;  %v1015_v18 = vmul.f32 %v3151_v15, %v3850_v42  ;;  %v3409_v11 = vpack.c.bf16 %v1142_v6, %v1141_v5  ;;  %v1145_v15 = vld [vmem:[%s4361_s1 + $0xe0] sm:$0xff] }
 0x51e   :  { %v1014_v17 = vmul.f32 %v1003_v16, %v3843_v39  ;;  %v1146_v16 = vld [vmem:[%s4361_s1 + $0xe8] sm:$0xff] }
 0x51f   :  { %3410 = vmatprep.subr.bf16.mxu1 %v3409_v11 }
 0x520   :  { %v1017_v19 = vadd.f32 %v1016_v14, %v1014_v17  ;;  %v3413_v14 = vpack.c.bf16 %v1144_v63, %v1143_v13  ;;  %v3417_v17 = vpack.c.bf16 %v1146_v16, %v1145_v15 }
 0x522   :  { %v1018_v20 = vadd.f32 %v1017_v19, %v1015_v18  ;;  %v1147_v18 = vld [vmem:[%s4361_s1 + $0xf0] sm:$0xff]  ;;  %v1148_v19 = vld [vmem:[%s4361_s1 + $0xf8] sm:$0xff] }
 0x524   :  { %3161 = vmatmul.mubr.msk.f32.vlgmr.msra.gmra.mrb[14].mxu1 %vm61_vm0, %v1018_v20  ;;  %v3421_v20 = vpack.c.bf16 %v1148_v19, %v1147_v18 }
 0x525   :  { %3412 = vmatpush3.bf16.msra.mxu1 %v3409_v11 }
 0x526   :  { %3414 = vmatprep.subr.bf16.mxu1 %v3413_v14 }
 0x529   :  { %3416 = vmatpush3.bf16.msra.mxu1 %v3413_v14 }
 0x52a   :  { %3418 = vmatprep.subr.bf16.mxu1 %v3417_v17 }
 0x52d   :  { %3420 = vmatpush3.bf16.msra.mxu1 %v3417_v17 }
 0x52e   :  { %3422 = vmatprep.subr.bf16.mxu1 %v3421_v20 }
 0x531   :  { %3424 = vmatpush3.bf16.msra.mxu1 %v3421_v20 }
 0x5f7   :  { %v3162_v23 = vpop.f32.mrb[14].mxu1 }
 0x5f8   :  { %v3950_v24 = vadd.f32 %v3162_v23, %v3707_v1  ;;  %v1095_v25 = vpop.f32.mrb[15].mxu1  ;;  %v1149_v23 = vld [vmem:[%s4361_s1 + $0x100] sm:$0xff] }
 0x5f9   :  { %v3953_v26 = vadd.f32 %v1095_v25, %v3702_v0  ;;  %v1150_v25 = vld [vmem:[%s4361_s1 + $0x108] sm:$0xff] }
 0x5fa   :  { %v1109_v27 = vsel %vm61_vm0, %v3950_v24, 0.0 }
 0x5fb   :  { %1110 = vadd.xlane.f32.xlu1 %v1109_v27  ;;  %v1106_v28 = vsel %vm61_vm0, %v3953_v26, 0.0  ;;  %v3425_v27 = vpack.c.bf16 %v1150_v25, %v1149_v23 }
 0x5fc   :  { %1107 = vadd.xlane.f32.xlu0 %v1106_v28  ;;  %v1151_v28 = vld [vmem:[%s4361_s1 + $0x110] sm:$0xff] }
 0x5fd   :  { %3426 = vmatprep.subr.bf16.mxu1 %v3425_v27 }
 0x5fe   :  { %3428 = vmatpush3.bf16.msra.mxu1 %v3425_v27 }
 0x688   :  { %v1111_v29 = vpop.xlane.xlu1 %1110 }
 0x689   :  { %v1113_v30 = vmul.f32 0.03125, %v1111_v29  ;;  %v1108_v31 = vpop.xlane.xlu0 %1107  ;;  %v1152_v29 = vld [vmem:[%s4361_s1 + $0x118] sm:$0xff] }
 0x68a   :  { %v1112_v32 = vmul.f32 0.03125, %v1108_v31  ;;  %v1153_v31 = vld [vmem:[%s4361_s1 + $0x120] sm:$0xff] }
 0x68b   :  { %v1115_v33 = vsub.f32 %v3950_v24, %v1113_v30  ;;  %v3429_v30 = vpack.c.bf16 %v1152_v29, %v1151_v28 }
 0x68c   :  { %v1114_v1 = vsub.f32 %v3953_v26, %v1112_v32  ;;  %v1154_v32 = vld [vmem:[%s4361_s1 + $0x128] sm:$0xff] }
 0x68d   :  { %v1117_v34 = vmul.f32 %v1115_v33, %v1115_v33  ;;  %3430 = vmatprep.subr.bf16.mxu1 %v3429_v30 }
 0x68e   :  { %v1116_v35 = vmul.f32 %v1114_v1, %v1114_v1  ;;  %3432 = vmatpush3.bf16.msra.mxu1 %v3429_v30 }
 0x68f   :  { %v1121_v0 = vsel %vm61_vm0, %v1117_v34, 0.0  ;;  %v1156_v34 = vld [vmem:[%s4361_s1 + $0x138] sm:$0xff] }
 0x690   :  { %1122 = vadd.xlane.f32.xlu1 %v1121_v0  ;;  %v1118_v36 = vsel %vm61_vm0, %v1116_v35, 0.0  ;;  %v1140_v0 = vld [vmem:[%s4363_s3 + $0x5] ss:$0 sm:$0xff] }
 0x691   :  { %1119 = vadd.xlane.f32.xlu0 %v1118_v36 }
 0x71d   :  { %v1123_v12 = vpop.xlane.xlu1 %1122 }
 0x71e   :  { %v1125_v46 = vmul.f32 0.03125, %v1123_v12  ;;  %v1120_v47 = vpop.xlane.xlu0 %1119 }
 0x71f   :  { %v1124_v48 = vmul.f32 0.03125, %v1120_v47 }
 0x720   :  { %v1127_v49 = vadd.f32 1e-05, %v1125_v46 }
 0x721   :  { %v1126_v51 = vadd.f32 1e-05, %v1124_v48 }
 0x722   :  { %3577 = vrsqrt.f32 %v1127_v49 }
 0x723   :  { %3579 = vrsqrt.f32 %v1126_v51 }
 0x72c   :  { %v3578_v53 = vpop.eup %3577 }
 0x72d   :  { %v3580_v55 = vpop.eup %3579  ;;  %v1131_v56 = vmul.f32 %v3578_v53, %v1115_v33  ;;  %v3433_v33 = vpack.c.bf16 %v1154_v32, %v1153_v31 }
 0x72e   :  { %v1130_v57 = vmul.f32 %v3580_v55, %v1114_v1  ;;  %v1155_v1 = vld [vmem:[%s4361_s1 + $0x130] sm:$0xff] }
 0x72f   :  { %v1133_v60 = vmul.f32 %v1131_v56, %v57_v54  ;;  %3434 = vmatprep.subr.bf16.mxu1 %v3433_v33  ;;  %v3437_v35 = vpack.c.bf16 %v1156_v34, %v1155_v1 }
 0x730   :  { %v1132_v62 = vmul.f32 %v1130_v57, %v57_v54  ;;  %3436 = vmatpush3.bf16.msra.mxu1 %v3433_v33 }
 0x731   :  { %v1135_v3 = vadd.f32 %v1133_v60, %v58_v58  ;;  %3438 = vmatprep.subr.bf16.mxu1 %v3437_v35 }
 0x732   :  { %v1134_v2 = vadd.f32 %v1132_v62, %v58_v58 }
 0x734   :  { %3171 = vmatprep.mubr.msk.f32.mxu0 %vm61_vm0, %v1134_v2  ;;  %3440 = vmatpush3.bf16.msra.mxu1 %v3437_v35 }
 0x735   :  { %3172 = vmatmul.mubr.msk.f32.vlgmr.msra.gmra.mrb[12].mxu0 %vm61_vm0, %v1135_v3 }
 0x808   :  { %v3173_v36 = vpop.f32.mrb[12].mxu0 }
 0x809   :  { %v1236_v37 = vadd.f32 %v3173_v36, %v1140_v0  ;;  %v1230_v40 = vpop.f32.mrb[13].mxu0 }
 0x80a   :  { %v1231_v41 = vadd.f32 %v1230_v40, %v1140_v0 }
 0x80b   :  { %v1240_v43 = vand.u32 2147483647, %v1236_v37  ;;  %vm1282_vm10 = vcmp.ge.f32.partialorder %v1236_v37, 0.0 }
 0x80c   :  { %v1239_v44 = vand.u32 2147483647, %v1231_v41  ;;  %vm1281_vm11 = vcmp.ge.f32.partialorder %v1231_v41, 0.0  ;;  %v1287_v40 = vmul.f32 0.5, %v1231_v41 }
 0x80d   :  { %v1242_v45 = vmul.f32 0.70710677, %v1240_v43 }
 0x80e   :  { %v1241_v12 = vmul.f32 0.70710677, %v1239_v44  ;;  %v1288_v44 = vmul.f32 0.5, %v1236_v37 }
 0x80f   :  { %v1244_v46 = vmul.f32 0.3275911, %v1242_v45  ;;  %v1270_v51 = vsub.f32 0.0, %v1242_v45 }
 0x810   :  { %v1243_v47 = vmul.f32 0.3275911, %v1241_v12  ;;  %v1269_v53 = vsub.f32 0.0, %v1241_v12 }
 0x811   :  { %v1246_v48 = vadd.f32 1.0, %v1244_v46  ;;  %v1272_v55 = vmul.f32 %v1270_v51, %v1242_v45  ;;  %v1157_v46 = vld [vmem:[%s4363_s3 + $0x4] ss:$0 sm:$0xff] }
 0x812   :  { %v1245_v49 = vadd.f32 1.0, %v1243_v47  ;;  %v1271_v58 = vmul.f32 %v1269_v53, %v1241_v12 }
 0x813   :  { %3581 = vrcp.f32 %v1246_v48  ;;  %v1275_v2 = vmul.f32 1.442695, %v1272_v55 }
 0x814   :  { %3583 = vrcp.f32 %v1245_v49  ;;  %v1273_v6 = vmul.f32 1.442695, %v1271_v58 }
 0x815   :  { %3585 = vpow2.f32 %v1275_v2 }
 0x816   :  { %3587 = vpow2.f32 %v1273_v6  ;;  %v1405_v6 = vld [vmem:[%s4361_s1 + $0x148] sm:$0xff] }
 0x81d   :  { %v3582_v54 = vpop.eup %3581 }
 0x81e   :  { %v3584_v56 = vpop.eup %3583  ;;  %v1252_v57 = vmul.f32 1.0614054, %v3582_v54 }
 0x81f   :  { %v1251_v60 = vmul.f32 1.0614054, %v3584_v56  ;;  %v3586_v27 = vpop.eup %3585 }
 0x820   :  { %v2863_v62 = vadd.f32 -1.4531521, %v1252_v57  ;;  %v3588_v29 = vpop.eup %3587 }
 0x821   :  { %v2862_v3 = vadd.f32 -1.4531521, %v1251_v60 }
 0x822   :  { %v1256_v5 = vmul.f32 %v3582_v54, %v2863_v62 }
 0x823   :  { %v1255_v11 = vmul.f32 %v3584_v56, %v2862_v3 }
 0x824   :  { %v1258_v13 = vadd.f32 1.4214138, %v1256_v5  ;;  %v1404_v5 = vld [vmem:[%s4361_s1 + $0x140] sm:$0xff] }
 0x825   :  { %v1257_v63 = vadd.f32 1.4214138, %v1255_v11  ;;  %v3441_v11 = vpack.c.bf16 %v1405_v6, %v1404_v5 }
 0x826   :  { %v1260_v14 = vmul.f32 %v3582_v54, %v1258_v13  ;;  %v1738_v13 = vld [vmem:[%s4361_s1 + $0x1c0] sm:$0xff] }
 0x827   :  { %v1259_v15 = vmul.f32 %v3584_v56, %v1257_v63  ;;  %v1739_v63 = vld [vmem:[%s4361_s1 + $0x1c8] sm:$0xff]  ;;  %3442 = vmatprep.subr.bf16.mxu0 %v3441_v11 }
 0x828   :  { %v2865_v16 = vadd.f32 -0.28449672, %v1260_v14  ;;  %v3473_v14 = vpack.c.bf16 %v1739_v63, %v1738_v13  ;;  %3444 = vmatpush3.bf16.msra.mxu0 %v3441_v11 }
 0x829   :  { %v2864_v17 = vadd.f32 -0.28449672, %v1259_v15  ;;  %v1406_v15 = vld [vmem:[%s4361_s1 + $0x150] sm:$0xff] }
 0x82a   :  { %v1264_v18 = vmul.f32 %v3582_v54, %v2865_v16  ;;  %3474 = vmatprep.subr.bf16.mxu1 %v3473_v14  ;;  %v1407_v16 = vld [vmem:[%s4361_s1 + $0x158] sm:$0xff] }
 0x82b   :  { %v1263_v19 = vmul.f32 %v3584_v56, %v2864_v17  ;;  %v1740_v17 = vld [vmem:[%s4361_s1 + $0x1d0] sm:$0xff] }
 0x82c   :  { %v1266_v20 = vadd.f32 0.2548296, %v1264_v18  ;;  %v3445_v18 = vpack.c.bf16 %v1407_v16, %v1406_v15 }
 0x82d   :  { %v1265_v23 = vadd.f32 0.2548296, %v1263_v19  ;;  %v1741_v19 = vld [vmem:[%s4361_s1 + $0x1d8] sm:$0xff] }
 0x82e   :  { %v1268_v25 = vmul.f32 %v3582_v54, %v1266_v20  ;;  %v3477_v20 = vpack.c.bf16 %v1741_v19, %v1740_v17  ;;  %3446 = vmatprep.subr.bf16.mxu0 %v3445_v18 }
 0x82f   :  { %v1267_v28 = vmul.f32 %v3584_v56, %v1265_v23  ;;  %3448 = vmatpush3.bf16.msra.mxu0 %v3445_v18  ;;  %v1491_v23 = vld [vmem:[%s4361_s1 + $0x160] sm:$0xff] }
 0x830   :  { %v1278_v30 = vmul.f32 %v3586_v27, %v1268_v25  ;;  %v1492_v25 = vld [vmem:[%s4361_s1 + $0x168] sm:$0xff] }
 0x831   :  { %v1277_v31 = vmul.f32 %v3588_v29, %v1267_v28  ;;  %v3449_v27 = vpack.c.bf16 %v1492_v25, %v1491_v23 }
 0x832   :  { %v1280_v32 = vsub.f32 1.0, %v1278_v30 }
 0x833   :  { %v1279_v33 = vsub.f32 1.0, %v1277_v31  ;;  %3450 = vmatprep.subr.bf16.mxu0 %v3449_v27 }
 0x834   :  { %v1284_v1 = vsub.f32 0.0, %v1280_v32 }
 0x835   :  { %v1283_v34 = vsub.f32 0.0, %v1279_v33 }
 0x836   :  { %v1286_v35 = vsel %vm1282_vm10, %v1280_v32, %v1284_v1 }
 0x837   :  { %v1290_v0 = vadd.f32 1.0, %v1286_v35  ;;  %v1285_v36 = vsel %vm1281_vm11, %v1279_v33, %v1283_v34  ;;  %v1368_v34 = vld [vmem:[%s4363_s3 + $0x6] ss:$0 sm:$0xff] }
 0x838   :  { %v1289_v43 = vadd.f32 1.0, %v1285_v36 }
 0x839   :  { %v1292_v12 = vmul.f32 %v1290_v0, %v1288_v44 }
 0x83a   :  { %v1291_v45 = vmul.f32 %v1289_v43, %v1287_v40  ;;  %v1369_v40 = vld [vmem:[%s4363_s3 + $0x7] ss:$0 sm:$0xff] }
 0x83c   :  { %3206 = vmatprep.mubr.f32.mxu1 %v1291_v45  ;;  %v1493_v45 = vld [vmem:[%s4361_s1 + $0x170] sm:$0xff] }
 0x83d   :  { %3207 = vmatmul.mubr.f32.vlgmr.msra.gmra.mrb[16].mxu1 %v1292_v12  ;;  %v1494_v12 = vld [vmem:[%s4361_s1 + $0x178] sm:$0xff] }
 0x83e   :  { %3476 = vmatpush3.bf16.msra.mxu1 %v3473_v14 }
 0x83f   :  { %3478 = vmatprep.subr.bf16.mxu1 %v3477_v20 }
 0x842   :  { %3480 = vmatpush3.bf16.msra.mxu1 %v3477_v20 }
 0x910   :  { %v3208_v47 = vpop.f32.mrb[16].mxu1 }
 0x911   :  { %v1365_v48 = vadd.f32 %v3208_v47, %v1157_v46  ;;  %v1359_v49 = vpop.f32.mrb[17].mxu1 }
 0x912   :  { %v1360_v51 = vadd.f32 %v1359_v49, %v1157_v46  ;;  %v1574_v49 = vld [vmem:[%s4361_s1 + $0x180] sm:$0xff] }
 0x913   :  { %v4038_v53 = vadd.f32 %v1365_v48, %v3950_v24  ;;  %v3453_v48 = vpack.c.bf16 %v1494_v12, %v1493_v45 }
 0x914   :  { %v4041_v54 = vadd.f32 %v1360_v51, %v3953_v26  ;;  %v1575_v51 = vld [vmem:[%s4361_s1 + $0x188] sm:$0xff] }
 0x915   :  { %v1377_v37 = vsel %vm61_vm0, %v4038_v53, 0.0 }
 0x916   :  { %1378 = vadd.xlane.f32.xlu1 %v1377_v37  ;;  %v1374_v41 = vsel %vm61_vm0, %v4041_v54, 0.0  ;;  %v3457_v37 = vpack.c.bf16 %v1575_v51, %v1574_v49 }
 0x917   :  { %1375 = vadd.xlane.f32.xlu0 %v1374_v41  ;;  %v1576_v41 = vld [vmem:[%s4361_s1 + $0x190] sm:$0xff] }
 0x9a3   :  { %v1379_v55 = vpop.xlane.xlu1 %1378 }
 0x9a4   :  { %v1381_v56 = vmul.f32 0.03125, %v1379_v55  ;;  %v1376_v57 = vpop.xlane.xlu0 %1375  ;;  %v1577_v55 = vld [vmem:[%s4361_s1 + $0x198] sm:$0xff] }
 0x9a5   :  { %v1380_v58 = vmul.f32 0.03125, %v1376_v57  ;;  %v1655_v57 = vld [vmem:[%s4361_s1 + $0x1a0] sm:$0xff] }
 0x9a6   :  { %v1383_v60 = vsub.f32 %v4038_v53, %v1381_v56  ;;  %v3461_v56 = vpack.c.bf16 %v1577_v55, %v1576_v41 }
 0x9a7   :  { %v1382_v24 = vsub.f32 %v4041_v54, %v1380_v58  ;;  %v1656_v58 = vld [vmem:[%s4361_s1 + $0x1a8] sm:$0xff] }
 0x9a8   :  { %v1385_v62 = vmul.f32 %v1383_v60, %v1383_v60 }
 0x9a9   :  { %v1384_v2 = vmul.f32 %v1382_v24, %v1382_v24 }
 0x9aa   :  { %v1389_v26 = vsel %vm61_vm0, %v1385_v62, 0.0  ;;  %v1658_v62 = vld [vmem:[%s4361_s1 + $0x1b8] sm:$0xff] }
 0x9ab   :  { %1390 = vadd.xlane.f32.xlu1 %v1389_v26  ;;  %v1386_v3 = vsel %vm61_vm0, %v1384_v2, 0.0 }
 0x9ac   :  { %1387 = vadd.xlane.f32.xlu0 %v1386_v3 }
 0xa38   :  { %v1391_v28 = vpop.xlane.xlu1 %1390 }
 0xa39   :  { %v1393_v29 = vmul.f32 0.03125, %v1391_v28  ;;  %v1388_v30 = vpop.xlane.xlu0 %1387 }
 0xa3a   :  { %v1392_v31 = vmul.f32 0.03125, %v1388_v30 }
 0xa3b   :  { %v1395_v32 = vadd.f32 1e-05, %v1393_v29 }
 0xa3c   :  { %v1394_v33 = vadd.f32 1e-05, %v1392_v31 }
 0xa3d   :  { %3589 = vrsqrt.f32 %v1395_v32 }
 0xa3e   :  { %3591 = vrsqrt.f32 %v1394_v33 }
 0xa47   :  { %v3590_v1 = vpop.eup %3589 }
 0xa48   :  { %v3592_v35 = vpop.eup %3591  ;;  %v1399_v0 = vmul.f32 %v3590_v1, %v1383_v60  ;;  %v3465_v60 = vpack.c.bf16 %v1656_v58, %v1655_v57 }
 0xa49   :  { %v1398_v36 = vmul.f32 %v3592_v35, %v1382_v24  ;;  %v1657_v24 = vld [vmem:[%s4361_s1 + $0x1b0] sm:$0xff] }
 0xa4a   :  { %v1401_v43 = vmul.f32 %v1399_v0, %v1368_v34  ;;  %v3469_v2 = vpack.c.bf16 %v1658_v62, %v1657_v24 }
 0xa4b   :  { %v1400_v44 = vmul.f32 %v1398_v36, %v1368_v34 }
 0xa4c   :  { %v1403_v47 = vadd.f32 %v1401_v43, %v1369_v40 }
 0xa4d   :  { %v1402_v46 = vadd.f32 %v1400_v44, %v1369_v40 }
 0xa4f   :  { %3217 = vmatprep.mubr.msk.f32.mxu0 %vm61_vm0, %v1402_v46  ;;  %3261 = vmatprep.mubr.msk.f32.mxu1 %vm61_vm0, %v1402_v46 }
 0xa50   :  { %3218 = vmatmul.mubr.msk.f32.vlgmr.msra.gmra.mrb[14].mxu0 %vm61_vm0, %v1403_v47  ;;  %3262 = vmatmul.mubr.msk.f32.vlgmr.msra.gmra.mrb[18].mxu1 %vm61_vm0, %v1403_v47 }
 0xa51   :  { %3452 = vmatpush3.bf16.msra.mxu0 %v3449_v27  ;;  %3228 = vmatprep.mubr.msk.f32.mxu0 %vm61_vm0, %v1402_v46 }
 0xa52   :  { %3454 = vmatprep.subr.bf16.mxu0 %v3453_v48 }
 0xa55   :  { %3456 = vmatpush3.bf16.msra.mxu0 %v3453_v48 }
 0xa56   :  { %3458 = vmatprep.subr.bf16.mxu0 %v3457_v37 }
 0xa58   :  { %3229 = vmatmul.mubr.msk.f32.vlgmr.msra.gmra.mrb[16].mxu0 %vm61_vm0, %v1403_v47 }
 0xa59   :  { %3460 = vmatpush3.bf16.msra.mxu0 %v3457_v37  ;;  %3239 = vmatprep.mubr.msk.f32.mxu0 %vm61_vm0, %v1402_v46 }
 0xa5a   :  { %3462 = vmatprep.subr.bf16.mxu0 %v3461_v56 }
 0xa5d   :  { %3464 = vmatpush3.bf16.msra.mxu0 %v3461_v56 }
 0xa5e   :  { %3466 = vmatprep.subr.bf16.mxu0 %v3465_v60 }
 0xa60   :  { %3240 = vmatmul.mubr.msk.f32.vlgmr.msra.gmra.mrb[18].mxu0 %vm61_vm0, %v1403_v47 }
 0xa61   :  { %3468 = vmatpush3.bf16.msra.mxu0 %v3465_v60  ;;  %3250 = vmatprep.mubr.msk.f32.mxu0 %vm61_vm0, %v1402_v46 }
 0xa62   :  { %3470 = vmatprep.subr.bf16.mxu0 %v3469_v2 }
 0xa65   :  { %3472 = vmatpush3.bf16.msra.mxu0 %v3469_v2 }
 0xa68   :  { %3251 = vmatmul.mubr.msk.f32.vlgmr.msra.gmra.mrb[20].mxu0 %vm61_vm0, %v1403_v47 }
 0xb23   :  { %v3219_v26 = vpop.f32.mrb[14].mxu0  ;;  %v4127_v3 = vpop.f32.mrb[18].mxu1 }
 0xb24   :  { %v1480_v5 = vpop.f32.mrb[15].mxu0  ;;  %v1808_v6 = vpop.f32.mrb[19].mxu1  ;;  %v1490_v13 = vmul.f32 %v3219_v26, %v3802_v7 }
 0xb25   :  { %3272 = vmatprep.subr.mxu1 %v1808_v6  ;;  %v1489_v15 = vmul.f32 %v1480_v5, %v3812_v9 }
 0xb26   :  { %3273 = vmatpush3.msra.mxu1 %v1808_v6 }
 0xb27   :  { %3288 = vmatprep.subr.mxu1 %v4127_v3 }
 0xb2b   :  { %v3230_v11 = vpop.f32.mrb[16].mxu0 }
 0xb2c   :  { %v1571_v63 = vmul.f32 %v3230_v11, %v3807_v8  ;;  %v1561_v14 = vpop.f32.mrb[17].mxu0 }
 0xb2d   :  { %v1570_v16 = vmul.f32 %v1561_v14, %v3817_v10 }
 0xb2e   :  { %v1573_v17 = vadd.f32 %v1571_v63, %v1490_v13 }
 0xb2f   :  { %v1572_v18 = vadd.f32 %v1570_v16, %v1489_v15 }
 0xb30   :  { %v2076_v35 = vmul.f32 %v1573_v17, %v3850_v42 }
 0xb31   :  { %v1817_v19 = vmul.f32 %v1572_v18, %v3827_v22  ;;  %v1818_v1 = vmul.f32 %v1572_v18, %v3839_v38  ;;  %v1819_v34 = vmul.f32 %v1572_v18, %v3843_v39 }
 0xb33   :  { %v3241_v20 = vpop.f32.mrb[18].mxu0  ;;  %3266 = vmatprep.mubr.msk.f32.mxu0 %vm61_vm0, %v1817_v19 }
 0xb34   :  { %v1644_v23 = vpop.f32.mrb[19].mxu0  ;;  %v1654_v27 = vmul.f32 %v3241_v20, %v3802_v7  ;;  %v1820_v7 = vmul.f32 %v1572_v18, %v3850_v42 }
 0xb35   :  { %v1653_v30 = vmul.f32 %v1644_v23, %v3812_v9  ;;  %v2074_v9 = vmul.f32 %v1573_v17, %v3839_v38 }
 0xb3b   :  { %v3252_v25 = vpop.f32.mrb[20].mxu0 }
 0xb3c   :  { %v1735_v28 = vmul.f32 %v3252_v25, %v3807_v8  ;;  %v1725_v29 = vpop.f32.mrb[21].mxu0  ;;  %v2073_v8 = vmul.f32 %v1573_v17, %v3827_v22 }
 0xb3d   :  { %v1734_v31 = vmul.f32 %v1725_v29, %v3817_v10  ;;  %v2075_v10 = vmul.f32 %v1573_v17, %v3843_v39 }
 0xb3e   :  { %v1737_v32 = vadd.f32 %v1735_v28, %v1654_v27 }
 0xb3f   :  { %v1736_v33 = vadd.f32 %v1734_v31, %v1653_v30 }
 0xb41   :  { %3264 = vmatprep.subr.msk.mxu0 %vm61_vm0, %v1736_v33 }
 0xb42   :  { %3265 = vmatpush3.xpose.msk.msra.mxu0 %vm61_vm0, %v1736_v33 }
 0xb43   :  { %3280 = vmatprep.subr.msk.mxu0 %vm61_vm0, %v1737_v32 }
 0xb45   :  { %3267 = vmatmul.mubr.msk.f32.vlgmr.msra.gmra.mrb[22].mxu0 %vm61_vm0, %v1818_v1 }
 0xb46   :  { %3269 = vmatprep.mubr.msk.f32.mxu0 %vm61_vm0, %v1819_v34  ;;  %3281 = vmatpush3.xpose.msk.msra.mxu0 %vm61_vm0, %v1737_v32 }
 0xb49   :  { %3270 = vmatmul.mubr.msk.f32.gmra.mrb[24].mxu0 %vm61_vm0, %v1820_v7 }
 0xb4a   :  { %3282 = vmatprep.mubr.msk.f32.mxu0 %vm61_vm0, %v2073_v8 }
 0xb4d   :  { %3283 = vmatmul.mubr.msk.f32.vlgmr.msra.gmra.mrb[26].mxu0 %vm61_vm0, %v2074_v9 }
 0xb4e   :  { %3285 = vmatprep.mubr.msk.f32.mxu0 %vm61_vm0, %v2075_v10 }
 0xb51   :  { %3286 = vmatmul.mubr.msk.f32.gmra.mrb[28].mxu0 %vm61_vm0, %v2076_v35 }
 0xc18   :  { %v3268_v0 = vpop.f32.mrb[22].mxu0 }
 0xc19   :  { %v1922_v36 = vsel %vm3867_vm5, %v3268_v0, -1e+30  ;;  %v1902_v40 = vpop.f32.mrb[23].mxu0 }
 0xc1a   :  { %v1921_v43 = vsel %vm3872_vm6, %v1902_v40, -1e+30  ;;  %v1928_v44 = vsel %vm614_vm7, %v1922_v36, -inf }
 0xc1b   :  { %1929 = vmax.xlane.f32.xlu1 %v1928_v44  ;;  %v1925_v45 = vsel %vm614_vm7, %v1921_v43, -inf }
 0xc1c   :  { %1926 = vmax.xlane.f32.xlu0 %v1925_v45  ;;  %v3271_v12 = vpop.f32.mrb[24].mxu0 }
 0xc1d   :  { %v1924_v46 = vsel %vm3882_vm8, %v3271_v12, -1e+30  ;;  %v1912_v47 = vpop.f32.mrb[25].mxu0 }
 0xc1e   :  { %v1923_v48 = vsel %vm3888_vm9, %v1912_v47, -1e+30  ;;  %v1934_v49 = vsel %vm614_vm7, %v1924_v46, -inf }
 0xc1f   :  { %1935 = vmax.xlane.f32.xlu1 %v1934_v49  ;;  %v1931_v51 = vsel %vm614_vm7, %v1923_v48, -inf }
 0xc20   :  { %v3284_v37 = vpop.f32.mrb[26].mxu0  ;;  %1932 = vmax.xlane.f32.xlu0 %v1931_v51 }
 0xc21   :  { %v2178_v41 = vsel %vm3867_vm5, %v3284_v37, -1e+30  ;;  %v2158_v55 = vpop.f32.mrb[27].mxu0 }
 0xc22   :  { %v2177_v56 = vsel %vm3872_vm6, %v2158_v55, -1e+30  ;;  %v2184_v57 = vsel %vm614_vm7, %v2178_v41, -inf }
 0xc23   :  { %2185 = vmax.xlane.f32.xlu1 %v2184_v57  ;;  %v2181_v58 = vsel %vm614_vm7, %v2177_v56, -inf }
 0xc24   :  { %v3287_v60 = vpop.f32.mrb[28].mxu0  ;;  %2182 = vmax.xlane.f32.xlu0 %v2181_v58 }
 0xc25   :  { %v2180_v24 = vsel %vm3882_vm8, %v3287_v60, -1e+30  ;;  %v2168_v62 = vpop.f32.mrb[29].mxu0 }
 0xc26   :  { %v2179_v2 = vsel %vm3888_vm9, %v2168_v62, -1e+30  ;;  %v2190_v50 = vsel %vm614_vm7, %v2180_v24, -inf }
 0xc27   :  { %2191 = vmax.xlane.f32.xlu1 %v2190_v50  ;;  %v2187_v52 = vsel %vm614_vm7, %v2179_v2, -inf }
 0xc28   :  { %2188 = vmax.xlane.f32.xlu0 %v2187_v52 }
 0xca8   :  { %v1930_v26 = vpop.xlane.xlu1 %1929 }
 0xca9   :  { %v1938_v5 = vsub.f32 %v1922_v36, %v1930_v26  ;;  %v1927_v6 = vpop.xlane.xlu0 %1926 }
 0xcaa   :  { %v1937_v11 = vsub.f32 %v1921_v43, %v1927_v6 }
 0xcab   :  { %v1943_v13 = vmul.f32 1.442695, %v1938_v5 }
 0xcac   :  { %v1941_v63 = vmul.f32 1.442695, %v1937_v11  ;;  %v1936_v14 = vpop.xlane.xlu1 %1935 }
 0xcad   :  { %3593 = vpow2.f32 %v1943_v13  ;;  %v1940_v59 = vsub.f32 %v1924_v46, %v1936_v14  ;;  %v1933_v15 = vpop.xlane.xlu0 %1932 }
 0xcae   :  { %3595 = vpow2.f32 %v1941_v63  ;;  %v1939_v16 = vsub.f32 %v1923_v48, %v1933_v15 }
 0xcaf   :  { %v1947_v61 = vmul.f32 1.442695, %v1940_v59 }
 0xcb0   :  { %v1945_v17 = vmul.f32 1.442695, %v1939_v16  ;;  %v2186_v18 = vpop.xlane.xlu1 %2185  ;;  %v2330_v16 = vld [vmem:[%s4361_s1 + $0x1e8] sm:$0xff] }
 0xcb1   :  { %3597 = vpow2.f32 %v1947_v61  ;;  %v2194_v19 = vsub.f32 %v2178_v41, %v2186_v18  ;;  %v2183_v20 = vpop.xlane.xlu0 %2182  ;;  %v2332_v18 = vld [vmem:[%s4361_s1 + $0x1f8] sm:$0xff] }
 0xcb2   :  { %3599 = vpow2.f32 %v1945_v17  ;;  %v2193_v23 = vsub.f32 %v2177_v56, %v2183_v20  ;;  %v2331_v17 = vld [vmem:[%s4361_s1 + $0x1f0] sm:$0xff] }
 0xcb3   :  { %v2199_v25 = vmul.f32 1.442695, %v2194_v19  ;;  %v3485_v19 = vpack.c.bf16 %v2332_v18, %v2331_v17  ;;  %v2451_v18 = vld [vmem:[%s4361_s1 + $0x200] sm:$0xff] }
 0xcb4   :  { %v2197_v27 = vmul.f32 1.442695, %v2193_v23  ;;  %v2192_v28 = vpop.xlane.xlu1 %2191 }
 0xcb5   :  { %3601 = vpow2.f32 %v2199_v25  ;;  %v2196_v29 = vsub.f32 %v2180_v24, %v2192_v28  ;;  %v2189_v30 = vpop.xlane.xlu0 %2188 }
 0xcb6   :  { %3603 = vpow2.f32 %v2197_v27  ;;  %v2195_v31 = vsub.f32 %v2179_v2, %v2189_v30 }
 0xcb7   :  { %v3594_v32 = vpop.eup %3593  ;;  %v2203_v33 = vmul.f32 1.442695, %v2196_v29 }
 0xcb8   :  { %v3596_v1 = vpop.eup %3595  ;;  %v2201_v34 = vmul.f32 1.442695, %v2195_v31  ;;  %v1952_v7 = vsel %vm614_vm7, %v3594_v32, 0.0 }
 0xcb9   :  { %3605 = vpow2.f32 %v2203_v33  ;;  %1953 = vadd.xlane.f32.xlu1 %v1952_v7  ;;  %v1949_v8 = vsel %vm614_vm7, %v3596_v1, 0.0 }
 0xcba   :  { %3607 = vpow2.f32 %v2201_v34  ;;  %1950 = vadd.xlane.f32.xlu0 %v1949_v8 }
 0xcbb   :  { %v3598_v9 = vpop.eup %3597 }
 0xcbc   :  { %v3600_v10 = vpop.eup %3599  ;;  %v1958_v35 = vsel %vm614_vm7, %v3598_v9, 0.0 }
 0xcbd   :  { %1959 = vadd.xlane.f32.xlu1 %v1958_v35  ;;  %v1955_v0 = vsel %vm614_vm7, %v3600_v10, 0.0 }
 0xcbe   :  { %1956 = vadd.xlane.f32.xlu0 %v1955_v0 }
 0xcbf   :  { %v3602_v36 = vpop.eup %3601 }
 0xcc0   :  { %v3604_v40 = vpop.eup %3603  ;;  %v2208_v43 = vsel %vm614_vm7, %v3602_v36, 0.0 }
 0xcc1   :  { %2209 = vadd.xlane.f32.xlu1 %v2208_v43  ;;  %v2205_v44 = vsel %vm614_vm7, %v3604_v40, 0.0 }
 0xcc2   :  { %2206 = vadd.xlane.f32.xlu0 %v2205_v44 }
 0xcc3   :  { %v3606_v45 = vpop.eup %3605 }
 0xcc4   :  { %v3608_v12 = vpop.eup %3607  ;;  %v2214_v46 = vsel %vm614_vm7, %v3606_v45, 0.0 }
 0xcc5   :  { %2215 = vadd.xlane.f32.xlu1 %v2214_v46  ;;  %v2211_v47 = vsel %vm614_vm7, %v3608_v12, 0.0 }
 0xcc6   :  { %2212 = vadd.xlane.f32.xlu0 %v2211_v47 }
 0xd46   :  { %v1954_v48 = vpop.xlane.xlu1 %1953 }
 0xd47   :  { %3609 = vrcp.f32 %v1954_v48  ;;  %v1951_v49 = vpop.xlane.xlu0 %1950 }
 0xd48   :  { %3611 = vrcp.f32 %v1951_v49 }
 0xd4a   :  { %v1960_v51 = vpop.xlane.xlu1 %1959 }
 0xd4b   :  { %3613 = vrcp.f32 %v1960_v51  ;;  %v1957_v37 = vpop.xlane.xlu0 %1956 }
 0xd4c   :  { %3615 = vrcp.f32 %v1957_v37 }
 0xd4e   :  { %v2210_v41 = vpop.xlane.xlu1 %2209 }
 0xd4f   :  { %3617 = vrcp.f32 %v2210_v41  ;;  %v2207_v55 = vpop.xlane.xlu0 %2206 }
 0xd50   :  { %3619 = vrcp.f32 %v2207_v55 }
 0xd51   :  { %v3610_v56 = vpop.eup %3609 }
 0xd52   :  { %v3612_v57 = vpop.eup %3611  ;;  %v2216_v58 = vpop.xlane.xlu1 %2215  ;;  %v1966_v62 = vmul.f32 %v3610_v56, %v3594_v32  ;;  %v2446_v56 = vld [vmem:[%s4362_s2 + $0x20] sm:$0xff] }
 0xd53   :  { %3621 = vrcp.f32 %v2216_v58  ;;  %v2213_v60 = vpop.xlane.xlu0 %2212  ;;  %v1965_v24 = vmul.f32 %v3612_v57, %v3596_v1  ;;  %v2447_v57 = vld [vmem:[%s4362_s2 + $0x28] sm:$0xff] }
 0xd54   :  { %3623 = vrcp.f32 %v2213_v60  ;;  %v3489_v58 = vpack.c.bf16 %v2447_v57, %v2446_v56  ;;  %v2448_v60 = vld [vmem:[%s4362_s2 + $0x30] sm:$0xff] }
 0xd55   :  { %v3614_v2 = vpop.eup %3613  ;;  %3274 = vmatprep.mubr.msk.f32.mxu1 %vm614_vm7, %v1965_v24  ;;  %v2449_v24 = vld [vmem:[%s4362_s2 + $0x38] sm:$0xff]  ;;  %s3666_s2 = smov [#allocation2]  }
 0xd56   :  { %v3616_v50 = vpop.eup %3615  ;;  %3275 = vmatmul.mubr.msk.f32.vlgmr.msra.gmra.mrb[20].mxu1 %vm614_vm7, %v1966_v62  ;;  %v1968_v26 = vmul.f32 %v3614_v2, %v3598_v9  ;;  %v3493_v62 = vpack.c.bf16 %v2449_v24, %v2448_v60  ;;  %s2819_s10 = sshll.u32 %s3666_s2, 4  ;;  %s2820_s10 = int_to_ptr.vmem [resolvable:$true] %s2819_s10 }
 0xd57   :  { %3289 = vmatpush3.msra.mxu1 %v4127_v3  ;;  %v1967_v52 = vmul.f32 %v3616_v50, %v3600_v10  ;;  %v2329_v3 = vld [vmem:[%s4361_s1 + $0x1e0] sm:$0xff]  ;;  %p3646_p1 = scmp.lt.s32.totalorder %s2820_s10, %s2820_s10 }
 0xd58   :  { %v3481_v61 = vpack.c.bf16 %v2330_v16, %v2329_v3  ;;  %3490 = vmatprep.subr.bf16.mxu1 %v3489_v58 }
 0xd59   :  { %v3618_v5 = vpop.eup %3617  ;;  %3277 = vmatprep.mubr.msk.f32.mxu1 %vm614_vm7, %v1967_v52 }
 0xd5a   :  { %v3620_v6 = vpop.eup %3619  ;;  %3278 = vmatmul.mubr.msk.f32.gmra.mrb[22].mxu1 %vm614_vm7, %v1968_v26  ;;  %v2222_v13 = vmul.f32 %v3618_v5, %v3602_v36  ;;  %3482 = vmatprep.subr.bf16.mxu0 %v3481_v61 }
 0xd5b   :  { %v2221_v11 = vmul.f32 %v3620_v6, %v3604_v40  ;;  %3484 = vmatpush3.bf16.msra.mxu0 %v3481_v61 }
 0xd5c   :  { %3486 = vmatprep.subr.bf16.mxu0 %v3485_v19 }
 0xd5d   :  { %v3622_v63 = vpop.eup %3621  ;;  %3290 = vmatprep.mubr.msk.f32.mxu1 %vm614_vm7, %v2221_v11 }
 0xd5e   :  { %v3624_v14 = vpop.eup %3623  ;;  %3291 = vmatmul.mubr.msk.f32.vlgmr.msra.gmra.mrb[24].mxu1 %vm614_vm7, %v2222_v13  ;;  %v2224_v15 = vmul.f32 %v3622_v63, %v3606_v45  ;;  %v1370_v13 = vld [vmem:[%s4363_s3 + $0x10] ss:$0 sm:$0xff] }
 0xd5f   :  { %v2223_v59 = vmul.f32 %v3624_v14, %v3608_v12  ;;  %3488 = vmatpush3.bf16.msra.mxu0 %v3485_v19  ;;  %3492 = vmatpush3.bf16.msra.mxu1 %v3489_v58  ;;  %v2452_v19 = vld [vmem:[%s4361_s1 + $0x208] sm:$0xff] }
 0xd60   :  { %3494 = vmatprep.subr.bf16.mxu1 %v3493_v62 }
 0xd61   :  { %3293 = vmatprep.mubr.msk.f32.mxu1 %vm614_vm7, %v2223_v59 }
 0xd62   :  { %3294 = vmatmul.mubr.msk.f32.gmra.mrb[26].mxu1 %vm614_vm7, %v2224_v15  ;;  %v1371_v15 = vld [vmem:[%s4363_s3 + $0x11] ss:$0 sm:$0xff] }
 0xd63   :  { %3496 = vmatpush3.bf16.msra.mxu1 %v3493_v62 }
 0xe29   :  { %v3276_v20 = vpop.f32.mrb[20].mxu1 }
 0xe2a   :  { %v2067_v23 = vmul.f32 %v3276_v20, %v3839_v38  ;;  %v2047_v25 = vpop.f32.mrb[21].mxu1  ;;  %v3497_v20 = vpack.c.bf16 %v2452_v19, %v2451_v18 }
 0xe2b   :  { %v2066_v27 = vmul.f32 %v2047_v25, %v3827_v22  ;;  %v2454_v25 = vld [vmem:[%s4361_s1 + $0x218] sm:$0xff] }
 0xe2c   :  { %3498 = vmatprep.subr.bf16.mxu0 %v3497_v20 }
 0xe2d   :  { %v2070_v28 = vadd.f32 %v2067_v23, %v2066_v27  ;;  %v3279_v29 = vpop.f32.mrb[22].mxu1  ;;  %v2453_v23 = vld [vmem:[%s4361_s1 + $0x210] sm:$0xff] }
 0xe2e   :  { %v2057_v30 = vpop.f32.mrb[23].mxu1  ;;  %v2069_v32 = vmul.f32 %v3279_v29, %v3850_v42  ;;  %v3501_v27 = vpack.c.bf16 %v2454_v25, %v2453_v23  ;;  %v2456_v29 = vld [vmem:[%s4361_s1 + $0x228] sm:$0xff] }
 0xe2f   :  { %v2068_v31 = vmul.f32 %v2057_v30, %v3843_v39 }
 0xe31   :  { %v2071_v33 = vadd.f32 %v2070_v28, %v2068_v31  ;;  %v3292_v1 = vpop.f32.mrb[24].mxu1  ;;  %v2455_v28 = vld [vmem:[%s4361_s1 + $0x220] sm:$0xff]  ;;  %v2457_v31 = vld [vmem:[%s4361_s1 + $0x230] sm:$0xff] }
 0xe32   :  { %v2323_v34 = vmul.f32 %v3292_v1, %v3839_v38  ;;  %v2303_v7 = vpop.f32.mrb[25].mxu1  ;;  %v3505_v30 = vpack.c.bf16 %v2456_v29, %v2455_v28  ;;  %v2459_v1 = vld [vmem:[%s4361_s1 + $0x240] sm:$0xff] }
 0xe33   :  { %v2072_v8 = vadd.f32 %v2071_v33, %v2069_v32  ;;  %v2322_v9 = vmul.f32 %v2303_v7, %v3827_v22  ;;  %v2458_v32 = vld [vmem:[%s4361_s1 + $0x238] sm:$0xff] }
 0xe34   :  { %v3509_v33 = vpack.c.bf16 %v2458_v32, %v2457_v31 }
 0xe35   :  { %v2326_v10 = vadd.f32 %v2323_v34, %v2322_v9  ;;  %v3295_v35 = vpop.f32.mrb[26].mxu1  ;;  %3304 = vmatprep.mubr.msk.f32.mxu0 %vm61_vm0, %v2072_v8  ;;  %v2460_v34 = vld [vmem:[%s4361_s1 + $0x248] sm:$0xff]  ;;  %v2461_v8 = vld [vmem:[%s4361_s1 + $0x250] sm:$0xff]  ;;  %v2462_v9 = vld [vmem:[%s4361_s1 + $0x258] sm:$0xff] }
 0xe36   :  { %v2313_v0 = vpop.f32.mrb[27].mxu1  ;;  %v2325_v40 = vmul.f32 %v3295_v35, %v3850_v42  ;;  %v3513_v7 = vpack.c.bf16 %v2460_v34, %v2459_v1  ;;  %v2463_v35 = vld [vmem:[%s4361_s1 + $0x260] sm:$0xff] }
 0xe37   :  { %v2324_v36 = vmul.f32 %v2313_v0, %v3843_v39  ;;  %v2464_v0 = vld [vmem:[%s4361_s1 + $0x268] sm:$0xff] }
 0xe39   :  { %v2327_v43 = vadd.f32 %v2326_v10, %v2324_v36  ;;  %v3517_v10 = vpack.c.bf16 %v2462_v9, %v2461_v8  ;;  %v3521_v36 = vpack.c.bf16 %v2464_v0, %v2463_v35  ;;  %v2467_v0 = vld [vmem:[%s4363_s3 + $0x12] ss:$0 sm:$0xff] }
 0xe3b   :  { %v2328_v44 = vadd.f32 %v2327_v43, %v2325_v40  ;;  %v2465_v40 = vld [vmem:[%s4361_s1 + $0x270] sm:$0xff]  ;;  %v2466_v43 = vld [vmem:[%s4361_s1 + $0x278] sm:$0xff] }
 0xe3d   :  { %3305 = vmatmul.mubr.msk.f32.vlgmr.msra.gmra.mrb[30].mxu0 %vm61_vm0, %v2328_v44  ;;  %v3525_v44 = vpack.c.bf16 %v2466_v43, %v2465_v40 }
 0xe3e   :  { %3500 = vmatpush3.bf16.msra.mxu0 %v3497_v20 }
 0xe3f   :  { %3502 = vmatprep.subr.bf16.mxu0 %v3501_v27 }
 0xe42   :  { %3504 = vmatpush3.bf16.msra.mxu0 %v3501_v27 }
 0xe43   :  { %3506 = vmatprep.subr.bf16.mxu0 %v3505_v30 }
 0xe46   :  { %3508 = vmatpush3.bf16.msra.mxu0 %v3505_v30 }
 0xe47   :  { %3510 = vmatprep.subr.bf16.mxu0 %v3509_v33 }
 0xe4a   :  { %3512 = vmatpush3.bf16.msra.mxu0 %v3509_v33 }
 0xe4b   :  { %3514 = vmatprep.subr.bf16.mxu0 %v3513_v7 }
 0xe4e   :  { %3516 = vmatpush3.bf16.msra.mxu0 %v3513_v7 }
 0xe4f   :  { %3518 = vmatprep.subr.bf16.mxu0 %v3517_v10 }
 0xe52   :  { %3520 = vmatpush3.bf16.msra.mxu0 %v3517_v10 }
 0xe53   :  { %3522 = vmatprep.subr.bf16.mxu0 %v3521_v36 }
 0xe56   :  { %3524 = vmatpush3.bf16.msra.mxu0 %v3521_v36 }
 0xe57   :  { %3526 = vmatprep.subr.bf16.mxu0 %v3525_v44 }
 0xe5a   :  { %3528 = vmatpush3.bf16.msra.mxu0 %v3525_v44 }
 0xf10   :  { %v3306_v45 = vpop.f32.mrb[30].mxu0 }
 0xf11   :  { %v4222_v38 = vadd.f32 %v3306_v45, %v4038_v53  ;;  %v2405_v12 = vpop.f32.mrb[31].mxu0  ;;  %v2450_v45 = vld [vmem:[%s4363_s3 + $0x13] ss:$0 sm:$0xff] }
 0xf12   :  { %v4225_v22 = vadd.f32 %v2405_v12, %v4041_v54 }
 0xf13   :  { %v2419_v46 = vsel %vm61_vm0, %v4222_v38, 0.0 }
 0xf14   :  { %2420 = vadd.xlane.f32.xlu1 %v2419_v46  ;;  %v2416_v39 = vsel %vm61_vm0, %v4225_v22, 0.0 }
 0xf15   :  { %2417 = vadd.xlane.f32.xlu0 %v2416_v39 }
 0xfa1   :  { %v2421_v42 = vpop.xlane.xlu1 %2420 }
 0xfa2   :  { %v2423_v47 = vmul.f32 0.03125, %v2421_v42  ;;  %v2418_v48 = vpop.xlane.xlu0 %2417 }
 0xfa3   :  { %v2422_v49 = vmul.f32 0.03125, %v2418_v48 }
 0xfa4   :  { %v2425_v51 = vsub.f32 %v4222_v38, %v2423_v47 }
 0xfa5   :  { %v2424_v53 = vsub.f32 %v4225_v22, %v2422_v49 }
 0xfa6   :  { %v2427_v37 = vmul.f32 %v2425_v51, %v2425_v51 }
 0xfa7   :  { %v2426_v41 = vmul.f32 %v2424_v53, %v2424_v53 }
 0xfa8   :  { %v2431_v54 = vsel %vm61_vm0, %v2427_v37, 0.0 }
 0xfa9   :  { %2432 = vadd.xlane.f32.xlu1 %v2431_v54  ;;  %v2428_v55 = vsel %vm61_vm0, %v2426_v41, 0.0 }
 0xfaa   :  { %2429 = vadd.xlane.f32.xlu0 %v2428_v55 }
0x1036   :  { %v2433_v2 = vpop.xlane.xlu1 %2432 }
0x1037   :  { %v2435_v50 = vmul.f32 0.03125, %v2433_v2  ;;  %v2430_v52 = vpop.xlane.xlu0 %2429 }
0x1038   :  { %v2434_v26 = vmul.f32 0.03125, %v2430_v52 }
0x1039   :  { %v2437_v5 = vadd.f32 1e-05, %v2435_v50 }
0x103a   :  { %v2436_v6 = vadd.f32 1e-05, %v2434_v26 }
0x103b   :  { %3625 = vrsqrt.f32 %v2437_v5 }
0x103c   :  { %3627 = vrsqrt.f32 %v2436_v6 }
0x1045   :  { %v3626_v11 = vpop.eup %3625 }
0x1046   :  { %v3628_v63 = vpop.eup %3627  ;;  %v2441_v14 = vmul.f32 %v3626_v11, %v2425_v51 }
0x1047   :  { %v2440_v59 = vmul.f32 %v3628_v63, %v2424_v53 }
0x1048   :  { %v2443_v3 = vmul.f32 %v2441_v14, %v1370_v13 }
0x1049   :  { %v2442_v16 = vmul.f32 %v2440_v59, %v1370_v13 }
0x104a   :  { %v2445_v17 = vadd.f32 %v2443_v3, %v1371_v15 }
0x104b   :  { %v2444_v61 = vadd.f32 %v2442_v16, %v1371_v15 }
0x104d   :  { %3315 = vmatprep.mubr.msk.f32.mxu1 %vm61_vm0, %v2444_v61 }
0x104e   :  { %3316 = vmatmul.mubr.msk.f32.vlgmr.msra.gmra.mrb[28].mxu1 %vm61_vm0, %v2445_v17 }
0x104f   :  { %2797 = vmatprep.mubr.f32.mxu1 %v3665_v21 }
0x1121   :  { %v3317_v12 = vpop.f32.mrb[28].mxu1 }
0x1122   :  { %v2546_v46 = vadd.f32 %v3317_v12, %v2450_v45  ;;  %v2540_v39 = vpop.f32.mrb[29].mxu1 }
0x1123   :  { %v2541_v42 = vadd.f32 %v2540_v39, %v2450_v45 }
0x1124   :  { %v2550_v47 = vand.u32 2147483647, %v2546_v46  ;;  %vm2592_vm12 = vcmp.ge.f32.partialorder %v2546_v46, 0.0  ;;  %v2598_v9 = vmul.f32 0.5, %v2546_v46 }
0x1125   :  { %v2549_v48 = vand.u32 2147483647, %v2541_v42  ;;  %vm2591_vm13 = vcmp.ge.f32.partialorder %v2541_v42, 0.0  ;;  %v2597_v7 = vmul.f32 0.5, %v2541_v42 }
0x1126   :  { %v2552_v49 = vmul.f32 0.70710677, %v2550_v47 }
0x1127   :  { %v2551_v51 = vmul.f32 0.70710677, %v2549_v48 }
0x1128   :  { %v2554_v53 = vmul.f32 0.3275911, %v2552_v49  ;;  %v2580_v55 = vsub.f32 0.0, %v2552_v49 }
0x1129   :  { %v2553_v37 = vmul.f32 0.3275911, %v2551_v51  ;;  %v2579_v56 = vsub.f32 0.0, %v2551_v51 }
0x112a   :  { %v2556_v41 = vadd.f32 1.0, %v2554_v53  ;;  %v2582_v58 = vmul.f32 %v2580_v55, %v2552_v49  ;;  %v2711_v55 = vld [vmem:[%s4364_s4 + $0x18] sm:$0xff] }
0x112b   :  { %v2555_v54 = vadd.f32 1.0, %v2553_v37  ;;  %v2581_v62 = vmul.f32 %v2579_v56, %v2551_v51 }
0x112c   :  { %3629 = vrcp.f32 %v2556_v41  ;;  %v2585_v52 = vmul.f32 1.442695, %v2582_v58  ;;  %v2710_v58 = vld [vmem:[%s4364_s4 + $0x10] sm:$0xff] }
0x112d   :  { %3631 = vrcp.f32 %v2555_v54  ;;  %v2583_v6 = vmul.f32 1.442695, %v2581_v62  ;;  %v2715_v62 = vld [vmem:[%s4364_s4 + $0x38] sm:$0xff] }
0x112e   :  { %3633 = vpow2.f32 %v2585_v52  ;;  %v2714_v52 = vld [vmem:[%s4364_s4 + $0x30] sm:$0xff] }
0x112f   :  { %3635 = vpow2.f32 %v2583_v6 }
0x1136   :  { %v3630_v57 = vpop.eup %3629 }
0x1137   :  { %v3632_v60 = vpop.eup %3631  ;;  %v2562_v24 = vmul.f32 1.0614054, %v3630_v57 }
0x1138   :  { %v2561_v2 = vmul.f32 1.0614054, %v3632_v60  ;;  %v3634_v20 = vpop.eup %3633 }
0x1139   :  { %v2899_v50 = vadd.f32 -1.4531521, %v2562_v24  ;;  %v3636_v25 = vpop.eup %3635  ;;  %v2713_v24 = vld [vmem:[%s4364_s4 + $0x28] sm:$0xff] }
0x113a   :  { %v2898_v26 = vadd.f32 -1.4531521, %v2561_v2  ;;  %v3533_v2 = vpack.c.bf16 %v2715_v62, %v2713_v24 }
0x113b   :  { %v2566_v5 = vmul.f32 %v3630_v57, %v2899_v50  ;;  %v2712_v50 = vld [vmem:[%s4364_s4 + $0x20] sm:$0xff] }
0x113c   :  { %v2565_v11 = vmul.f32 %v3632_v60, %v2898_v26  ;;  %v3535_v26 = vpack.c.bf16 %v2714_v52, %v2712_v50 }
0x113d   :  { %v2568_v13 = vadd.f32 1.4214138, %v2566_v5 }
0x113e   :  { %v2567_v63 = vadd.f32 1.4214138, %v2565_v11 }
0x113f   :  { %v2570_v14 = vmul.f32 %v3630_v57, %v2568_v13 }
0x1140   :  { %v2569_v59 = vmul.f32 %v3632_v60, %v2567_v63 }
0x1141   :  { %v2901_v15 = vadd.f32 -0.28449672, %v2570_v14 }
0x1142   :  { %v2900_v3 = vadd.f32 -0.28449672, %v2569_v59 }
0x1143   :  { %v2574_v16 = vmul.f32 %v3630_v57, %v2901_v15 }
0x1144   :  { %v2573_v61 = vmul.f32 %v3632_v60, %v2900_v3 }
0x1145   :  { %v2576_v17 = vadd.f32 0.2548296, %v2574_v16 }
0x1146   :  { %v2575_v18 = vadd.f32 0.2548296, %v2573_v61  ;;  %v2719_v61 = vsub.s32 0, %v3795_v4 }
0x1147   :  { %v2578_v19 = vmul.f32 %v3630_v57, %v2576_v17  ;;  %v2708_v57 = vld [vmem:[%s4364_s4] sm:$0xff]  ;;  %v2902_v17 = vld [vmem:[%s4363_s3 + $0x14] ss:$8 sm:$0x3]  ;;  %s3641_s3 = scalar_lea.vmem %s2820_s10, 512 }
0x1148   :  { %v2577_v23 = vmul.f32 %v3632_v60, %v2575_v18  ;;  %v3531_v60 = vpack.c.bf16 %v2710_v58, %v2708_v57  ;;  %v2723_v18 = vsub.s32 1, %v3795_v4  ;;  %p3642_p0 = scmp.ne.s32.totalorder %s2820_s10, %s3641_s3  ;;  %p3647_p2 = scmp.lt.s32.totalorder %s3641_s3, %s3641_s3 }
0x1149   :  { %v2588_v27 = vmul.f32 %v3634_v20, %v2578_v19  ;;  %v2720_v19 = vrot.slane %v2902_v17, %v2719_v61 }
0x114a   :  { %v2587_v28 = vmul.f32 %v3636_v25, %v2577_v23  ;;  %v2724_v20 = vrot.slane %v2902_v17, %v2723_v18  ;;  %p3648_p3 = por %p3647_p2, %p3646_p1 }
0x114b   :  { %v2590_v29 = vsub.f32 1.0, %v2588_v27 }
0x114c   :  { %v2589_v30 = vsub.f32 1.0, %v2587_v28  ;;  %p3649_p4 = pnand %p3648_p3, %p3642_p0 }
0x114d   :  { %v2594_v31 = vsub.f32 0.0, %v2590_v29 }
0x114e   :  { %v2593_v32 = vsub.f32 0.0, %v2589_v30 }
0x114f   :  { %v2596_v33 = vsel %vm2592_vm12, %v2590_v29, %v2594_v31 }
0x1150   :  { %v2600_v1 = vadd.f32 1.0, %v2596_v33  ;;  %v2595_v34 = vsel %vm2591_vm13, %v2589_v30, %v2593_v32 }
0x1151   :  { %v2599_v8 = vadd.f32 1.0, %v2595_v34 }
0x1152   :  { %v2602_v35 = vmul.f32 %v2600_v1, %v2598_v9 }
0x1153   :  { %v2601_v10 = vmul.f32 %v2599_v8, %v2597_v7 }
0x1155   :  { %3350 = vmatprep.mubr.f32.mxu0 %v2601_v10 }
0x1156   :  { %3351 = vmatmul.mubr.f32.vlgmr.msra.gmra.mrb[32].mxu0 %v2602_v35 }
0x1229   :  { %v3352_v36 = vpop.f32.mrb[32].mxu0 }
0x122a   :  { %v2675_v40 = vadd.f32 %v3352_v36, %v2467_v0  ;;  %v2669_v43 = vpop.f32.mrb[33].mxu0 }
0x122b   :  { %v2670_v44 = vadd.f32 %v2669_v43, %v2467_v0 }
0x122c   :  { %v2679_v45 = vadd.f32 %v2675_v40, %v4222_v38 }
0x122d   :  { %v2678_v12 = vadd.f32 %v2670_v44, %v4225_v22  ;;  %v2709_v22 = vld [vmem:[%s4364_s4 + $0x8] sm:$0xff] }
0x122e   :  { %v2685_v39 = vsel %vm61_vm0, %v2679_v45, 0.0  ;;  %v3529_v56 = vpack.c.bf16 %v2711_v55, %v2709_v22 }
0x122f   :  { %2686 = vadd.xlane.f32.xlu1 %v2685_v39  ;;  %v2682_v46 = vsel %vm61_vm0, %v2678_v12, 0.0 }
0x1230   :  { %2683 = vadd.xlane.f32.xlu0 %v2682_v46  ;;  %3530 = vmatprep.subr.bf16.mxu1 %v3529_v56 }
0x1231   :  { %3532 = vmatpush1.bf16.msra.mxu1 %v3531_v60 }
0x1232   :  { %3534 = vmatprep.subr.bf16.mxu1 %v3533_v2 }
0x1235   :  { %3536 = vmatpush1.bf16.msra.mxu1 %v3535_v26 }
0x12bc   :  { %v2687_v42 = vpop.xlane.xlu1 %2686 }
0x12bd   :  { %v2689_v47 = vmul.f32 0.03125, %v2687_v42  ;;  %v2684_v48 = vpop.xlane.xlu0 %2683 }
0x12be   :  { %v2688_v49 = vmul.f32 0.03125, %v2684_v48 }
0x12bf   :  { %v2691_v51 = vsub.f32 %v2679_v45, %v2689_v47 }
0x12c0   :  { %v2690_v53 = vsub.f32 %v2678_v12, %v2688_v49 }
0x12c1   :  { %v2693_v37 = vmul.f32 %v2691_v51, %v2691_v51 }
0x12c2   :  { %v2692_v41 = vmul.f32 %v2690_v53, %v2690_v53 }
0x12c3   :  { %v2697_v54 = vsel %vm61_vm0, %v2693_v37, 0.0 }
0x12c4   :  { %2698 = vadd.xlane.f32.xlu1 %v2697_v54  ;;  %v2694_v38 = vsel %vm61_vm0, %v2692_v41, 0.0 }
0x12c5   :  { %2695 = vadd.xlane.f32.xlu0 %v2694_v38 }
0x1351   :  { %v2699_v5 = vpop.xlane.xlu1 %2698 }
0x1352   :  { %v2701_v6 = vmul.f32 0.03125, %v2699_v5  ;;  %v2696_v11 = vpop.xlane.xlu0 %2695 }
0x1353   :  { %v2700_v13 = vmul.f32 0.03125, %v2696_v11 }
0x1354   :  { %v2703_v63 = vadd.f32 1e-05, %v2701_v6 }
0x1355   :  { %v2702_v14 = vadd.f32 1e-05, %v2700_v13 }
0x1357   :  { %3637 = vrsqrt.f32 %v2702_v14 }
0x1358   :  { %3639 = vrsqrt.f32 %v2703_v63 }
0x1361   :  { %v3638_v59 = vpop.eup %3637 }
0x1362   :  { %v2706_v15 = vmul.f32 %v3638_v59, %v2690_v53  ;;  %v3640_v3 = vpop.eup %3639 }
0x1363   :  { %v2707_v16 = vmul.f32 %v3640_v3, %v2691_v51 }
0x1364   :  { %2903 = vmatmul.mubr.msk.f32.vlgmr.msra.gmra.mrb[30].mxu1 %vm61_vm0, %v2706_v15 }
0x1365   :  { %2803 = vmatprep.mubr.f32.mxu1 %v3665_v21 }
0x1368   :  { %2904 = vmatmul.mubr.msk.f32.gmra.mrb[32].mxu1 %vm61_vm0, %v2707_v16 }
0x1437   :  { %v2799_v23 = vpop.f32.mrb[30].mxu1 }
0x1438   :  { %v2800_v25 = vadd.f32 %v2799_v23, %v2720_v19  ;;  %v2801_v27 = vpop.f32.mrb[31].mxu1 }
0x1439   :  { %v2802_v28 = vadd.f32 %v2801_v27, %v2724_v20 }
0x143a   :  { %2810 = vst [vmem:[#allocation2] sm:$0xff] %v2800_v25 }
0x143b   :  { %2811 = vst [vmem:[#allocation2 + $0x8] sm:$0xff] %v2802_v28  ;;  %v2805_v21 = vpop.f32.mrb[32].mxu1 }
0x143c   :  { %v2806_v29 = vadd.f32 %v2805_v21, %v2720_v19  ;;  %v2807_v30 = vpop.f32.mrb[33].mxu1 }
0x143d   :  { %v2808_v31 = vadd.f32 %v2807_v30, %v2724_v20 }
0x143e   :  { %2812 = vst [vmem:[#allocation2 + $0x10] sm:$0xff] %v2806_v29 }
0x143f   :  { %2813 = vst [vmem:[#allocation2 + $0x18] sm:$0xff] %v2808_v31 }
0x1440   :  { %3652 = shalt.err (!%p3649_p4)
}
0x1441   :  { %s3653_s13 = scalar_lea.hbm %s4365_s5, 512 }
0x1442   :  { %p3654_p5 = scmp.ne.s32.totalorder %s4365_s5, %s3653_s13  ;;  %p3657_p6 = scmp.lt.u32.totalorder %s3653_s13, %s4365_s5 }
0x1444   :  { %p3659_p7 = pnand %p3657_p6, %p3654_p5 }
0x1446   :  { %3662 = shalt.err (!%p3659_p7)
}
0x1447   :  { %s3667_s1 = smov 256   ;;  %s3668_s18 = smov 16  }
0x1448   :  { %2825 = dma.vmem_to_hbm [thread:$0]  %s2820_s10, 512, %s4365_s5, [#allocation3], %s3667_s1, %s3667_s1, %s3668_s18  }
0x1449   :  { %3663 = dma.done.wait [#allocation3], 512  }
0x144a   :  { %3664 = vsyncadd [#allocation3], 4294966784 }
0x144b   :  { %2829 = vsyncpa [#allocation3], 1 }

</bundles_post_ra>
